<compile_context>
chip_gen: v6e
topology: v6e:2x2x1
jax: 0.10.0
libtpu: 0.0.40
codegen_flags: <defaults>
</compile_context>

<pallas_src>
import functools

import numpy as np
import jax
import jax.numpy as jnp
from jax.experimental import pallas as pl
from jax.experimental.pallas import tpu as pltpu

# ----- physical constants copied from the PyTorch script -----
DX_UN = 69600000000.0
DT_UN = 5413.93
NU_UN = DX_UN ** 2 / DT_UN
NU_VISC = 0.1 * NU_UN
TE_UN = 1000000.0
VX_UN = 100000.0
G_CONST = 6.6743e-11
IDX = 248  # hard-coded slice index from forward()
_LN10 = float(np.log(10.0))


def _round_up(x, m):
    return ((x + m - 1) // m) * m


# =============================================================================
# Pallas kernel (one batch tile per grid step; scalar accumulators across steps)
# =============================================================================
def _conservation_kernel(in_phys_ref, preds_ref, targets_ref, out_ref,
                         sl1_acc, r2_acc, cnt_acc, svar_acc, *,
                         batch, tile_b, cout, seq_len, idx, n_phys,
                         in_means, in_stds, out_means, out_stds,
                         lambda_mass, lambda_momentum):
    i = pl.program_id(0)
    TB, P, L = tile_b, n_phys, seq_len

    @pl.when(i == 0)
    def _init():
        sl1_acc[...] = jnp.zeros_like(sl1_acc)
        r2_acc[...] = jnp.zeros_like(r2_acc)
        cnt_acc[...] = jnp.zeros_like(cnt_acc)
        svar_acc[...] = jnp.zeros_like(svar_acc)

    def recip(z):
        # EUP approx reciprocal + one Newton step (review: stencil-recip accuracy).
        r = pl.reciprocal(z, approx=True)
        return r * (2.0 - z * r)

    # ---------- SmoothL1(beta=1) partial sum over this batch tile ----------
    # (padded batch rows have preds == targets == 0, so they contribute exactly 0)
    diff = preds_ref[...] - targets_ref[...]
    ad = jnp.abs(diff)
    sl1 = jnp.where(ad < 1.0, 0.5 * diff * diff, ad - 0.5)
    sl1_acc[...] += jnp.sum(jnp.sum(sl1, axis=1, keepdims=True),
                            axis=0, keepdims=True)

    # rows of this tile that are real (not batch padding)
    row = jax.lax.broadcasted_iota(jnp.int32, (TB, 1), 0)
    valid = (i * TB + row) < batch                       # (TB, 1) bool

    # ---------- denormalize ('standardization') + physical unscaling ----------
    def in_ch(c, scale=1.0):
        return in_phys_ref[c] * (in_stds[c] * scale) + in_means[c] * scale

    def out_ch(c, scale=1.0):
        # physics window carved from the flat (TB, 3*L) preds block (static slice)
        w = preds_ref[:, c * L + idx:c * L + idx + P]
        return w * (out_stds[c] * scale) + out_means[c] * scale

    R = in_ch(0, DX_UN)
    Lx = in_ch(1, DX_UN)          # shared derivative grid
    Bf = in_ch(2)
    a_a0 = in_ch(3, 1.0 / DX_UN)
    alpha = in_ch(4)
    n_pred = out_ch(0)
    v_pred = out_ch(1, VX_UN)
    T_pred = out_ch(2, TE_UN)

    def prev_next(z):
        # non-negative shifts only; wrap-around columns are masked below
        return pltpu.roll(z, 1, 1), pltpu.roll(z, P - 1, 1)

    # ---------- shared Lagrange grid coefficients (computed once, reused 4x) ----------
    xm, xp = prev_next(Lx)
    dm = Lx - xm                  # x_i     - x_{i-1}
    dp = xp - Lx                  # x_{i+1} - x_i
    dpm = xp - xm                 # x_{i+1} - x_{i-1}
    rdm, rdp, rdpm = recip(dm), recip(dp), recip(dpm)
    # first-derivative interior stencil (coefficients of y_{i-1}, y_i, y_{i+1})
    c0 = -dp * (rdm * rdpm)
    c1 = (dp - dm) * (rdm * rdp)
    c2 = dm * (rdp * rdpm)
    # second-derivative interior stencil
    s_all = 2.0 * (rdm * rdp) * rdpm
    s0 = dp * s_all
    s1 = -dpm * s_all
    s2 = dm * s_all

    # boundary stencils from the first / last three grid nodes (shared by all fields)
    xa0, xa1, xa2 = Lx[:, 0:1], Lx[:, 1:2], Lx[:, 2:3]
    xb0, xb1, xb2 = Lx[:, P - 3:P - 2], Lx[:, P - 2:P - 1], Lx[:, P - 1:P]
    a_f, b_f, c_f = xa1 - xa0, xa2 - xa1, xa2 - xa0
    a_l, b_l, c_l = xb1 - xb0, xb2 - xb1, xb2 - xb0
    ra_f, rb_f, rc_f = recip(a_f), recip(b_f), recip(c_f)
    ra_l, rb_l, rc_l = recip(a_l), recip(b_l), recip(c_l)
    f0 = -(a_f + c_f) * (ra_f * rc_f)        # cfd, first column
    f1 = c_f * (ra_f * rb_f)
    f2 = -a_f * (rb_f * rc_f)
    l0 = b_l * (ra_l * rc_l)                 # cfd, last column
    l1 = -c_l * (ra_l * rb_l)
    l2 = (b_l + c_l) * (rb_l * rc_l)
    g0 = 2.0 * (ra_f * rc_f)                 # csd, first column
    g1 = -2.0 * (ra_f * rb_f)
    g2 = 2.0 * (rb_f * rc_f)
    h0 = 2.0 * (ra_l * rc_l)                 # csd, last column
    h1 = -2.0 * (ra_l * rb_l)
    h2 = 2.0 * (rb_l * rc_l)

    # single boundary mask, reused by all four derivative applications
    col = jax.lax.broadcasted_iota(jnp.int32, (TB, P), 1)
    is_first = col == 0
    is_last = col == P - 1

    def cfd_of(y, ym, yp):
        d_int = c0 * ym + c1 * y + c2 * yp
        d_first = f0 * y[:, 0:1] + f1 * y[:, 1:2] + f2 * y[:, 2:3]
        d_last = (l0 * y[:, P - 3:P - 2] + l1 * y[:, P - 2:P - 1]
                  + l2 * y[:, P - 1:P])
        return jnp.where(is_first, d_first, jnp.where(is_last, d_last, d_int))

    def csd_of(y, ym, yp):
        d_int = s0 * ym + s1 * y + s2 * yp
        d_first = g0 * y[:, 0:1] + g1 * y[:, 1:2] + g2 * y[:, 2:3]
        d_last = (h0 * y[:, P - 3:P - 2] + h1 * y[:, P - 2:P - 1]
                  + h2 * y[:, P - 1:P])
        return jnp.where(is_first, d_first, jnp.where(is_last, d_last, d_int))

    nT = n_pred * T_pred
    nTm, nTp = prev_next(nT)
    vm, vp = prev_next(v_pred)

    dnT_dL = cfd_of(nT, nTm, nTp)
    dv2_dL = cfd_of(v_pred * v_pred, vm * vm, vp * vp)
    dv_dL = cfd_of(v_pred, vm, vp)
    d2v_dL2 = csd_of(v_pred, vm, vp)

    gradp = dnT_dL * recip(n_pred)
    rR = recip(R)
    gravf = (G_CONST * jnp.cos(alpha)) * (rR * rR)
    vgradv = dv2_dL - v_pred * dv_dL
    visc = -NU_VISC * (d2v_dL2 + dv_dL * a_a0)

    resid = vgradv + gradp + visc + gravf
    r2 = resid * resid
    ok = jnp.logical_and(jnp.logical_not(jnp.isnan(r2)), valid)   # nanmean + row mask
    r2_acc[...] += jnp.sum(jnp.sum(jnp.where(ok, r2, 0.0), axis=1, keepdims=True),
                           axis=0, keepdims=True)
    cnt_acc[...] += jnp.sum(jnp.sum(jnp.where(ok, 1.0, 0.0), axis=1, keepdims=True),
                            axis=0, keepdims=True)

    nvB = n_pred * v_pred * recip(Bf)
    mu = jnp.sum(nvB, axis=1, keepdims=True) * (1.0 / float(P))
    dev = nvB - mu
    var = jnp.sum(dev * dev, axis=1, keepdims=True) * (1.0 / float(P - 1))  # torch.std (unbiased)
    row_std = jnp.sqrt(var)                                                  # (TB, 1)
    svar_acc[...] += jnp.sum(jnp.where(valid, row_std, 0.0),
                             axis=0, keepdims=True)

    # ---------- finalize: lambda weighting / magnitude_diff epilogue ----------
    @pl.when(i == pl.num_programs(0) - 1)
    def _finalize():
        # exact scalar divisions (review: remove approx-recip bias from nanmean/means)
        smooth_l1 = sl1_acc[...] * (1.0 / float(batch * cout * L))
        momentum_loss = jnp.sqrt(r2_acc[...] / cnt_acc[...])
        mass_loss = jnp.sqrt(svar_acc[...] * (1.0 / float(batch)))
        constraint = momentum_loss * lambda_momentum + mass_loss * lambda_mass
        # torch: (log10(c) - log10(s)).to(torch.long) truncates toward zero.
        # TODO(synk): torch casts magnitude_diff to float64; TPU keeps float32 here.
        log_ratio = jnp.log10(constraint) - jnp.log10(smooth_l1)
        mag = jnp.where(smooth_l1 < constraint,
                        log_ratio.astype(jnp.int32).astype(jnp.float32),
                        jnp.zeros_like(log_ratio))
        new_smooth_l1 = smooth_l1 * jnp.exp(mag * _LN10)       # == smooth_l1 * 10**mag
        total_loss = new_smooth_l1 + constraint

        # single consolidated (1, 8) scalar output, written exactly once
        lane = jax.lax.broadcasted_iota(jnp.int32, (1, 8), 1)

        def place(val, k):
            return jnp.where(lane == k, val, 0.0)

        out_ref[...] = (place(total_loss, 0) + place(new_smooth_l1, 1)
                        + place(constraint, 2) + place(smooth_l1, 3)
                        + place(momentum_loss, 4) + place(mass_loss, 5))


# =============================================================================
# Wrapper (equivalent of ConservationCriterion.forward)
# =============================================================================
def conservation_criterion(inputs, preds, targets, *,
                           lambda_mass, lambda_momentum,
                           in_means, in_stds, out_means, out_stds,
                           tile_b=256, return_aux=False):
    # TODO(synk): if upstream activations are bf16, pass them through as bf16 and
    # upcast after load inside the kernel (halves input HBM bytes) instead of f32 here.
    inputs = jnp.asarray(inputs, jnp.float32)
    preds = jnp.asarray(preds, jnp.float32)
    targets = jnp.asarray(targets, jnp.float32)

    if lambda_momentum == 0 and lambda_mass == 0:
        d = preds - targets
        ad = jnp.abs(d)
        sl1 = jnp.mean(jnp.where(ad < 1.0, 0.5 * d * d, ad - 0.5))
        out = (sl1, sl1, jnp.float32(0.0))
        if return_aux:
            return out + ((sl1, jnp.float32(0.0), jnp.float32(0.0)),)
        return out

    B, Cin, L = inputs.shape
    Cout = preds.shape[1]
    P = L - IDX

    # Batch tile: multiple of 8 sublanes; sized so double-buffered blocks stay well
    # under v7x's 64 MiB VMEM and v5e's 16 MiB default scoped limit (review items).
    TB = max(8, min(_round_up(int(tile_b), 8), _round_up(B, 8)))
    num_tiles = pl.cdiv(B, TB)
    B_pad = num_tiles * TB
    if B_pad != B:
        pad = ((0, B_pad - B), (0, 0), (0, 0))
        inputs = jnp.pad(inputs, pad)     # padded rows masked out in-kernel
        preds = jnp.pad(preds, pad)       # zero-diff padding -> 0 SmoothL1 contribution
        targets = jnp.pad(targets, pad)

    # Physics window as a channel-major 3-D slab -> in-kernel channel views are ref[c].
    # TODO(synk): keep activations channel-major upstream (or pad so the [IDX:] window
    # starts on a 128-lane boundary) to drop this wrapper transpose entirely.
    inputs_phys = jnp.transpose(inputs[:, :, IDX:], (1, 0, 2))      # (Cin, B_pad, P)
    preds_flat = preds.reshape(B_pad, Cout * L)                     # free reshape
    targets_flat = targets.reshape(B_pad, Cout * L)

    kernel = functools.partial(
        _conservation_kernel,
        batch=B, tile_b=TB, cout=Cout, seq_len=L, idx=IDX, n_phys=P,
        in_means=tuple(float(m) for m in in_means),
        in_stds=tuple(float(s) for s in in_stds),
        out_means=tuple(float(m) for m in out_means),
        out_stds=tuple(float(s) for s in out_stds),
        lambda_mass=float(lambda_mass),
        lambda_momentum=float(lambda_momentum))

    # TODO(synk): on v7x split the batch-tile axis across the 2 TensorCores (per-core
    # partial accumulators reduced in the wrapper); axis kept "arbitrary" here because
    # the scalar accumulators carry across grid steps.
    res = pl.pallas_call(
        kernel,
        out_shape=jax.ShapeDtypeStruct((1, 8), jnp.float32),
        grid_spec=pltpu.PrefetchScalarGridSpec(
            num_scalar_prefetch=0,
            grid=(num_tiles,),
            in_specs=[
                pl.BlockSpec((Cin, TB, P), lambda i: (0, i, 0)),
                pl.BlockSpec((TB, Cout * L), lambda i: (i, 0)),
                pl.BlockSpec((TB, Cout * L), lambda i: (i, 0)),
            ],
            out_specs=pl.BlockSpec((1, 8), lambda i: (0, 0)),
            scratch_shapes=[pltpu.VMEM((1, 1), jnp.float32)] * 4),
        compiler_params=pltpu.CompilerParams(
            dimension_semantics=("arbitrary",),
            vmem_limit_bytes=48 * 1024 * 1024),
    )(inputs_phys, preds_flat, targets_flat)

    total, new_sl1, constraint = res[0, 0], res[0, 1], res[0, 2]
    sl1, momentum, mass = res[0, 3], res[0, 4], res[0, 5]
    if return_aux:
        return total, new_sl1, constraint, (sl1, momentum, mass)
    return total, new_sl1, constraint


# =============================================================================
# Pure-JAX reference (faithful transcription of the PyTorch module; test only)
# =============================================================================
def _lagrange_derivative(x, x0, x1, x2, y0, y1, y2):
    p0 = y0 * (2.0 * x - x1 - x2) / ((x0 - x1) * (x0 - x2))
    p1 = y1 * (2.0 * x - x0 - x2) / ((x1 - x0) * (x1 - x2))
    p2 = y2 * (2.0 * x - x0 - x1) / ((x2 - x0) * (x2 - x1))
    return p0 + p1 + p2


def _ref_cfd(x, y):
    d_first = _lagrange_derivative(x[:, 0:1], x[:, 0:1], x[:, 1:2], x[:, 2:3],
                                   y[:, 0:1], y[:, 1:2], y[:, 2:3])
    d_int = _lagrange_derivative(x[:, 1:-1], x[:, :-2], x[:, 1:-1], x[:, 2:],
                                 y[:, :-2], y[:, 1:-1], y[:, 2:])
    d_last = _lagrange_derivative(x[:, -1:], x[:, -3:-2], x[:, -2:-1], x[:, -1:],
                                  y[:, -3:-2], y[:, -2:-1], y[:, -1:])
    return jnp.concatenate([d_first, d_int, d_last], axis=1)


def _ref_csd(x, y):
    def sd(x0, x1, x2, y0, y1, y2):
        return (2.0 * ((x1 - x0) * y2 - (x2 - x0) * y1 + (x2 - x1) * y0)
                / ((x1 - x0) * (x2 - x1) * (x2 - x0)))
    d_first = sd(x[:, 0:1], x[:, 1:2], x[:, 2:3], y[:, 0:1], y[:, 1:2], y[:, 2:3])
    d_int = sd(x[:, :-2], x[:, 1:-1], x[:, 2:], y[:, :-2], y[:, 1:-1], y[:, 2:])
    d_last = sd(x[:, -3:-2], x[:, -2:-1], x[:, -1:],
                y[:, -3:-2], y[:, -2:-1], y[:, -1:])
    return jnp.concatenate([d_first, d_int, d_last], axis=1)


def _reference_losses(inputs, preds, targets, in_means, in_stds, out_means, out_stds):
    d = preds - targets
    ad = jnp.abs(d)
    smooth_l1 = jnp.mean(jnp.where(ad < 1.0, 0.5 * d * d, ad - 0.5))

    def din(c):
        return inputs[:, c, IDX:] * in_stds[c] + in_means[c]

    def dout(c):
        return preds[:, c, IDX:] * out_stds[c] + out_means[c]

    R = din(0) * DX_UN
    L = din(1) * DX_UN
    Bf = din(2)
    a_a0 = din(3) / DX_UN
    alpha = din(4)
    n = dout(0)
    v = dout(1) * VX_UN
    T = dout(2) * TE_UN

    dnT_dL = _ref_cfd(L, n * T)
    dv2_dL = _ref_cfd(L, v ** 2)
    dv_dL = _ref_cfd(L, v)
    d2v_dL2 = _ref_csd(L, v)

    gradp = dnT_dL / n
    gravf = G_CONST * jnp.cos(alpha) / R ** 2
    vgradv = dv2_dL + (-v * dv_dL)
    visc = -NU_VISC * (d2v_dL2 + dv_dL * a_a0)
    momentum_loss = jnp.sqrt(jnp.nanmean((vgradv + gradp + visc + gravf) ** 2))

    nvB = n * v / Bf
    mass_loss = jnp.sqrt(jnp.mean(jnp.std(nvB, axis=1, ddof=1)))
    return smooth_l1, momentum_loss, mass_loss


# =============================================================================
# demo
# =============================================================================
if __name__ == "__main__":
    key = jax.random.PRNGKey(0)
    # B=12 (not a multiple of the 8-row tile) exercises batch padding + row masking;
    # physics slice [IDX:] is exactly 128 lane-aligned points.
    B, Lseq = 12, IDX + 128
    k1, k2, k3, k4, k5, k6, k7, k8, k9 = jax.random.split(key, 9)

    # inputs (normalized space); L channel made monotonic so derivatives are well posed
    r_ch = 1.0 + 0.1 * jax.random.uniform(k1, (B, Lseq))
    l_ch = 0.3 + jnp.cumsum(0.01 * (1.0 + jax.random.uniform(k2, (B, Lseq))), axis=1)
    b_ch = 1.0 + 0.2 * jax.random.uniform(k3, (B, Lseq))
    a_ch = 0.5 + 0.1 * jax.random.uniform(k4, (B, Lseq))
    al_ch = 1.2 * jax.random.uniform(k5, (B, Lseq))
    inputs = jnp.stack([r_ch, l_ch, b_ch, a_ch, al_ch], axis=1).astype(jnp.float32)

    n_ch = 1.0 + 0.2 * jax.random.uniform(k6, (B, Lseq))
    v_ch = 0.5 + 0.3 * jax.random.uniform(k7, (B, Lseq))
    t_ch = 1.0 + 0.2 * jax.random.uniform(k8, (B, Lseq))
    preds = jnp.stack([n_ch, v_ch, t_ch], axis=1).astype(jnp.float32)
    targets = (preds + 0.05 * jax.random.normal(k9, preds.shape)).astype(jnp.float32)

    # deterministic synthetic normalization_info ('standardization' for every channel)
    in_means = (0.1, 0.2, 0.0, 0.05, 0.0)
    in_stds = (1.1, 0.9, 1.0, 1.2, 1.0)
    out_means = (0.5, 0.0, 0.1)
    out_stds = (1.0, 1.5, 0.8)

    # as if criterion.update_lambda(new_lambda_mass=1.0, new_lambda_momentum=1.0) was called
    lambda_mass, lambda_momentum = 1.0, 1.0

    total, new_sl1, constraint, (sl1, momentum, mass) = conservation_criterion(
        inputs, preds, targets,
        lambda_mass=lambda_mass, lambda_momentum=lambda_momentum,
        in_means=in_means, in_stds=in_stds,
        out_means=out_means, out_stds=out_stds,
        tile_b=8,   # small tile -> multi-step grid + padded last tile in the demo
        return_aux=True)
    jax.block_until_ready((total, new_sl1, constraint, sl1, momentum, mass))

    # ---- validate all pieces against a faithful (torch-style) pure-JAX reference ----
    ref_sl1, ref_mom, ref_mass = _reference_losses(
        inputs, preds, targets, in_means, in_stds, out_means, out_stds)
    ref_constraint = float(ref_mom) * lambda_momentum + float(ref_mass) * lambda_mass
    np.testing.assert_allclose(float(sl1), float(ref_sl1), rtol=1e-4)
    np.testing.assert_allclose(float(momentum), float(ref_mom), rtol=5e-3)
    np.testing.assert_allclose(float(mass), float(ref_mass), rtol=5e-3)
    np.testing.assert_allclose(float(constraint), ref_constraint, rtol=5e-3)

    # validate the in-kernel lambda / magnitude_diff epilogue against the torch formula
    s, c = float(sl1), float(constraint)
    exp_mag = float(int(np.log10(c) - np.log10(s))) if s < c else 0.0
    exp_new_sl1 = s * (10.0 ** exp_mag)
    np.testing.assert_allclose(float(new_sl1), exp_new_sl1, rtol=1e-3)
    np.testing.assert_allclose(float(total), exp_new_sl1 + c, rtol=1e-3)

    print("KERNEL_OK")
</pallas_src>

<mosaic_0001>
module attributes {stable_mosaic.version = 11 : i64} {
  func.func @_conservation_kernel(%arg0: i32, %arg1: memref<5x8x128xf32, #tpu.memory_space<vmem>>, %arg2: memref<8x1128xf32, #tpu.memory_space<vmem>>, %arg3: memref<8x1128xf32, #tpu.memory_space<vmem>>, %arg4: memref<1x8xf32, #tpu.memory_space<vmem>>, %arg5: memref<1x1xf32, #tpu.memory_space<vmem>>, %arg6: memref<1x1xf32, #tpu.memory_space<vmem>>, %arg7: memref<1x1xf32, #tpu.memory_space<vmem>>, %arg8: memref<1x1xf32, #tpu.memory_space<vmem>>) attributes {dimension_semantics = [#tpu.dimension_semantics<arbitrary>], iteration_bounds = array<i64: 2>, scalar_prefetch = 0 : i64, scratch_operands = 4 : i64, tpu.core_type = #tpu.core_type<tc>, window_params = [{transform_indices = @transform_0, window_bounds = array<i64: 5, 8, 128>}, {transform_indices = @transform_1, window_bounds = array<i64: 8, 1128>}, {transform_indices = @transform_2, window_bounds = array<i64: 8, 1128>}, {pipeline_mode = #tpu.pipeline_mode<synchronous>, transform_indices = @transform_3, window_bounds = array<i64: 1, 8>}]} {
    %c0_i32 = arith.constant 0 : i32
    %0 = arith.cmpi eq, %arg0, %c0_i32 : i32
    %1 = arith.extui %0 : i1 to i32
    %c0_i32_0 = arith.constant 0 : i32
    %2 = arith.cmpi ne, %1, %c0_i32_0 : i32
    scf.if %2 {
      %cst_102 = arith.constant 0.000000e+00 : f32
      %390 = vector.broadcast %cst_102 : f32 to vector<1x1xf32>
      %c0_103 = arith.constant 0 : index
      %c0_104 = arith.constant 0 : index
      %391 = vector.load %arg5[%c0_103, %c0_104] : memref<1x1xf32, #tpu.memory_space<vmem>>, vector<1x1xf32>
      tpu.vector_store %arg5[%c0_103, %c0_104], %390 {strides = array<i32>} : memref<1x1xf32, #tpu.memory_space<vmem>>, vector<1x1xf32>,
      %cst_105 = arith.constant 0.000000e+00 : f32
      %392 = vector.broadcast %cst_105 : f32 to vector<1x1xf32>
      %c0_106 = arith.constant 0 : index
      %c0_107 = arith.constant 0 : index
      %393 = vector.load %arg6[%c0_106, %c0_107] : memref<1x1xf32, #tpu.memory_space<vmem>>, vector<1x1xf32>
      tpu.vector_store %arg6[%c0_106, %c0_107], %392 {strides = array<i32>} : memref<1x1xf32, #tpu.memory_space<vmem>>, vector<1x1xf32>,
      %cst_108 = arith.constant 0.000000e+00 : f32
      %394 = vector.broadcast %cst_108 : f32 to vector<1x1xf32>
      %c0_109 = arith.constant 0 : index
      %c0_110 = arith.constant 0 : index
      %395 = vector.load %arg7[%c0_109, %c0_110] : memref<1x1xf32, #tpu.memory_space<vmem>>, vector<1x1xf32>
      tpu.vector_store %arg7[%c0_109, %c0_110], %394 {strides = array<i32>} : memref<1x1xf32, #tpu.memory_space<vmem>>, vector<1x1xf32>,
      %cst_111 = arith.constant 0.000000e+00 : f32
      %396 = vector.broadcast %cst_111 : f32 to vector<1x1xf32>
      %c0_112 = arith.constant 0 : index
      %c0_113 = arith.constant 0 : index
      %397 = vector.load %arg8[%c0_112, %c0_113] : memref<1x1xf32, #tpu.memory_space<vmem>>, vector<1x1xf32>
      tpu.vector_store %arg8[%c0_112, %c0_113], %396 {strides = array<i32>} : memref<1x1xf32, #tpu.memory_space<vmem>>, vector<1x1xf32>,
    } else {
    }
    %c0 = arith.constant 0 : index
    %c0_1 = arith.constant 0 : index
    %3 = vector.load %arg2[%c0, %c0_1] : memref<8x1128xf32, #tpu.memory_space<vmem>>, vector<8x1128xf32>
    %c0_2 = arith.constant 0 : index
    %c0_3 = arith.constant 0 : index
    %4 = vector.load %arg3[%c0_2, %c0_3] : memref<8x1128xf32, #tpu.memory_space<vmem>>, vector<8x1128xf32>
    %5 = arith.subf %3, %4 : vector<8x1128xf32>
    %6 = math.absf %5 : vector<8x1128xf32>
    %cst = arith.constant 1.000000e+00 : f32
    %7 = vector.broadcast %cst : f32 to vector<8x1128xf32>
    %8 = arith.cmpf olt, %6, %7 : vector<8x1128xf32>
    %cst_4 = arith.constant 5.000000e-01 : f32
    %9 = vector.broadcast %cst_4 : f32 to vector<8x1128xf32>
    %10 = arith.mulf %9, %5 : vector<8x1128xf32>
    %11 = arith.mulf %10, %5 : vector<8x1128xf32>
    %cst_5 = arith.constant 5.000000e-01 : f32
    %12 = vector.broadcast %cst_5 : f32 to vector<8x1128xf32>
    %13 = arith.subf %6, %12 : vector<8x1128xf32>
    %14 = arith.select %8, %11, %13 : vector<8x1128xi1>, vector<8x1128xf32>
    %c0_6 = arith.constant 0 : index
    %c0_7 = arith.constant 0 : index
    %15 = vector.load %arg5[%c0_6, %c0_7] : memref<1x1xf32, #tpu.memory_space<vmem>>, vector<1x1xf32>
    %cst_8 = arith.constant dense<0.000000e+00> : vector<8xf32>
    %16 = vector.multi_reduction <add>, %14, %cst_8 [1] : vector<8x1128xf32> to vector<8xf32>
    %17 = vector.shape_cast %16 : vector<8xf32> to vector<8x1xf32>
    %cst_9 = arith.constant dense<0.000000e+00> : vector<1xf32>
    %18 = vector.multi_reduction <add>, %17, %cst_9 [0] : vector<8x1xf32> to vector<1xf32>
    %19 = vector.shape_cast %18 : vector<1xf32> to vector<1x1xf32>
    %20 = arith.addf %15, %19 : vector<1x1xf32>
    %c0_10 = arith.constant 0 : index
    %c0_11 = arith.constant 0 : index
    %21 = vector.load %arg5[%c0_10, %c0_11] : memref<1x1xf32, #tpu.memory_space<vmem>>, vector<1x1xf32>
    tpu.vector_store %arg5[%c0_10, %c0_11], %20 {strides = array<i32>} : memref<1x1xf32, #tpu.memory_space<vmem>>, vector<1x1xf32>,
    %22 = tpu.iota {dimensions = array<i32: 0>} : vector<8x1xi32>
    %c8_i32 = arith.constant 8 : i32
    %23 = arith.muli %arg0, %c8_i32 : i32
    %24 = vector.broadcast %23 : i32 to vector<8x1xi32>
    %25 = arith.addi %24, %22 : vector<8x1xi32>
    %c12_i32 = arith.constant 12 : i32
    %26 = vector.broadcast %c12_i32 : i32 to vector<8x1xi32>
    %27 = arith.cmpi slt, %25, %26 : vector<8x1xi32>
    %c0_12 = arith.constant 0 : index
    %c0_13 = arith.constant 0 : index
    %c0_14 = arith.constant 0 : index
    %28 = vector.load %arg1[%c0_12, %c0_13, %c0_14] : memref<5x8x128xf32, #tpu.memory_space<vmem>>, vector<1x8x128xf32>
    %29 = vector.shape_cast %28 : vector<1x8x128xf32> to vector<8x128xf32>
    %cst_15 = arith.constant 7.65599989E+10 : f32
    %30 = vector.broadcast %cst_15 : f32 to vector<8x128xf32>
    %31 = arith.mulf %29, %30 : vector<8x128xf32>
    %cst_16 = arith.constant 6.960000e+09 : f32
    %32 = vector.broadcast %cst_16 : f32 to vector<8x128xf32>
    %33 = arith.addf %31, %32 : vector<8x128xf32>
    %c1 = arith.constant 1 : index
    %c0_17 = arith.constant 0 : index
    %c0_18 = arith.constant 0 : index
    %34 = vector.load %arg1[%c1, %c0_17, %c0_18] : memref<5x8x128xf32, #tpu.memory_space<vmem>>, vector<1x8x128xf32>
    %35 = vector.shape_cast %34 : vector<1x8x128xf32> to vector<8x128xf32>
    %cst_19 = arith.constant 6.264000e+10 : f32
    %36 = vector.broadcast %cst_19 : f32 to vector<8x128xf32>
    %37 = arith.mulf %35, %36 : vector<8x128xf32>
    %cst_20 = arith.constant 1.392000e+10 : f32
    %38 = vector.broadcast %cst_20 : f32 to vector<8x128xf32>
    %39 = arith.addf %37, %38 : vector<8x128xf32>
    %c2 = arith.constant 2 : index
    %c0_21 = arith.constant 0 : index
    %c0_22 = arith.constant 0 : index
    %40 = vector.load %arg1[%c2, %c0_21, %c0_22] : memref<5x8x128xf32, #tpu.memory_space<vmem>>, vector<1x8x128xf32>
    %41 = vector.shape_cast %40 : vector<1x8x128xf32> to vector<8x128xf32>
    %cst_23 = arith.constant 1.000000e+00 : f32
    %42 = vector.broadcast %cst_23 : f32 to vector<8x128xf32>
    %43 = arith.mulf %41, %42 : vector<8x128xf32>
    %cst_24 = arith.constant 0.000000e+00 : f32
    %44 = vector.broadcast %cst_24 : f32 to vector<8x128xf32>
    %45 = arith.addf %43, %44 : vector<8x128xf32>
    %c3 = arith.constant 3 : index
    %c0_25 = arith.constant 0 : index
    %c0_26 = arith.constant 0 : index
    %46 = vector.load %arg1[%c3, %c0_25, %c0_26] : memref<5x8x128xf32, #tpu.memory_space<vmem>>, vector<1x8x128xf32>
    %47 = vector.shape_cast %46 : vector<1x8x128xf32> to vector<8x128xf32>
    %cst_27 = arith.constant 1.72413785E-11 : f32
    %48 = vector.broadcast %cst_27 : f32 to vector<8x128xf32>
    %49 = arith.mulf %47, %48 : vector<8x128xf32>
    %cst_28 = arith.constant 7.18390787E-13 : f32
    %50 = vector.broadcast %cst_28 : f32 to vector<8x128xf32>
    %51 = arith.addf %49, %50 : vector<8x128xf32>
    %c4 = arith.constant 4 : index
    %c0_29 = arith.constant 0 : index
    %c0_30 = arith.constant 0 : index
    %52 = vector.load %arg1[%c4, %c0_29, %c0_30] : memref<5x8x128xf32, #tpu.memory_space<vmem>>, vector<1x8x128xf32>
    %53 = vector.shape_cast %52 : vector<1x8x128xf32> to vector<8x128xf32>
    %cst_31 = arith.constant 1.000000e+00 : f32
    %54 = vector.broadcast %cst_31 : f32 to vector<8x128xf32>
    %55 = arith.mulf %53, %54 : vector<8x128xf32>
    %cst_32 = arith.constant 0.000000e+00 : f32
    %56 = vector.broadcast %cst_32 : f32 to vector<8x128xf32>
    %57 = arith.addf %55, %56 : vector<8x128xf32>
    %c0_33 = arith.constant 0 : index
    %c248 = arith.constant 248 : index
    %58 = vector.load %arg2[%c0_33, %c248] : memref<8x1128xf32, #tpu.memory_space<vmem>>, vector<8x128xf32>
    %cst_34 = arith.constant 1.000000e+00 : f32
    %59 = vector.broadcast %cst_34 : f32 to vector<8x128xf32>
    %60 = arith.mulf %58, %59 : vector<8x128xf32>
    %cst_35 = arith.constant 5.000000e-01 : f32
    %61 = vector.broadcast %cst_35 : f32 to vector<8x128xf32>
    %62 = arith.addf %60, %61 : vector<8x128xf32>
    %c0_36 = arith.constant 0 : index
    %c624 = arith.constant 624 : index
    %63 = vector.load %arg2[%c0_36, %c624] : memref<8x1128xf32, #tpu.memory_space<vmem>>, vector<8x128xf32>
    %cst_37 = arith.constant 1.500000e+05 : f32
    %64 = vector.broadcast %cst_37 : f32 to vector<8x128xf32>
    %65 = arith.mulf %63, %64 : vector<8x128xf32>
    %cst_38 = arith.constant 0.000000e+00 : f32
    %66 = vector.broadcast %cst_38 : f32 to vector<8x128xf32>
    %67 = arith.addf %65, %66 : vector<8x128xf32>
    %c0_39 = arith.constant 0 : index
    %c1000 = arith.constant 1000 : index
    %68 = vector.load %arg2[%c0_39, %c1000] : memref<8x1128xf32, #tpu.memory_space<vmem>>, vector<8x128xf32>
    %cst_40 = arith.constant 8.000000e+05 : f32
    %69 = vector.broadcast %cst_40 : f32 to vector<8x128xf32>
    %70 = arith.mulf %68, %69 : vector<8x128xf32>
    %cst_41 = arith.constant 1.000000e+05 : f32
    %71 = vector.broadcast %cst_41 : f32 to vector<8x128xf32>
    %72 = arith.addf %70, %71 : vector<8x128xf32>
    %c1_i32 = arith.constant 1 : i32
    %73 = tpu.dynamic_rotate %39 by %c1_i32 dim 1 : vector<8x128xf32>, i32 -> vector<8x128xf32>
    %c127_i32 = arith.constant 127 : i32
    %74 = tpu.dynamic_rotate %39 by %c127_i32 dim 1 : vector<8x128xf32>, i32 -> vector<8x128xf32>
    %75 = arith.subf %39, %73 : vector<8x128xf32>
    %76 = arith.subf %74, %39 : vector<8x128xf32>
    %77 = arith.subf %74, %73 : vector<8x128xf32>
    %78 = tpu.reciprocal %75 {approx = true} : vector<8x128xf32> -> vector<8x128xf32>
    %79 = arith.mulf %75, %78 : vector<8x128xf32>
    %cst_42 = arith.constant 2.000000e+00 : f32
    %80 = vector.broadcast %cst_42 : f32 to vector<8x128xf32>
    %81 = arith.subf %80, %79 : vector<8x128xf32>
    %82 = arith.mulf %78, %81 : vector<8x128xf32>
    %83 = tpu.reciprocal %76 {approx = true} : vector<8x128xf32> -> vector<8x128xf32>
    %84 = arith.mulf %76, %83 : vector<8x128xf32>
    %cst_43 = arith.constant 2.000000e+00 : f32
    %85 = vector.broadcast %cst_43 : f32 to vector<8x128xf32>
    %86 = arith.subf %85, %84 : vector<8x128xf32>
    %87 = arith.mulf %83, %86 : vector<8x128xf32>
    %88 = tpu.reciprocal %77 {approx = true} : vector<8x128xf32> -> vector<8x128xf32>
    %89 = arith.mulf %77, %88 : vector<8x128xf32>
    %cst_44 = arith.constant 2.000000e+00 : f32
    %90 = vector.broadcast %cst_44 : f32 to vector<8x128xf32>
    %91 = arith.subf %90, %89 : vector<8x128xf32>
    %92 = arith.mulf %88, %91 : vector<8x128xf32>
    %cst_45 = arith.constant 0.000000e+00 : f32
    %93 = vector.broadcast %cst_45 : f32 to vector<8x128xf32>
    %94 = arith.subf %93, %76 : vector<8x128xf32>
    %95 = arith.mulf %82, %92 : vector<8x128xf32>
    %96 = arith.mulf %94, %95 : vector<8x128xf32>
    %97 = arith.subf %76, %75 : vector<8x128xf32>
    %98 = arith.mulf %82, %87 : vector<8x128xf32>
    %99 = arith.mulf %97, %98 : vector<8x128xf32>
    %100 = arith.mulf %87, %92 : vector<8x128xf32>
    %101 = arith.mulf %75, %100 : vector<8x128xf32>
    %102 = arith.mulf %82, %87 : vector<8x128xf32>
    %cst_46 = arith.constant 2.000000e+00 : f32
    %103 = vector.broadcast %cst_46 : f32 to vector<8x128xf32>
    %104 = arith.mulf %103, %102 : vector<8x128xf32>
    %105 = arith.mulf %104, %92 : vector<8x128xf32>
    %106 = arith.mulf %76, %105 : vector<8x128xf32>
    %cst_47 = arith.constant 0.000000e+00 : f32
    %107 = vector.broadcast %cst_47 : f32 to vector<8x128xf32>
    %108 = arith.subf %107, %77 : vector<8x128xf32>
    %109 = arith.mulf %108, %105 : vector<8x128xf32>
    %110 = arith.mulf %75, %105 : vector<8x128xf32>
    %111 = vector.extract_strided_slice %39 {offsets = [0, 0], sizes = [8, 1], strides = [1, 1]} : vector<8x128xf32> to vector<8x1xf32>
    %112 = vector.extract_strided_slice %39 {offsets = [0, 1], sizes = [8, 1], strides = [1, 1]} : vector<8x128xf32> to vector<8x1xf32>
    %113 = vector.extract_strided_slice %39 {offsets = [0, 2], sizes = [8, 1], strides = [1, 1]} : vector<8x128xf32> to vector<8x1xf32>
    %114 = vector.extract_strided_slice %39 {offsets = [0, 125], sizes = [8, 1], strides = [1, 1]} : vector<8x128xf32> to vector<8x1xf32>
    %115 = vector.extract_strided_slice %39 {offsets = [0, 126], sizes = [8, 1], strides = [1, 1]} : vector<8x128xf32> to vector<8x1xf32>
    %116 = vector.extract_strided_slice %39 {offsets = [0, 127], sizes = [8, 1], strides = [1, 1]} : vector<8x128xf32> to vector<8x1xf32>
    %117 = arith.subf %112, %111 : vector<8x1xf32>
    %118 = arith.subf %113, %112 : vector<8x1xf32>
    %119 = arith.subf %113, %111 : vector<8x1xf32>
    %120 = arith.subf %115, %114 : vector<8x1xf32>
    %121 = arith.subf %116, %115 : vector<8x1xf32>
    %122 = arith.subf %116, %114 : vector<8x1xf32>
    %123 = tpu.reciprocal %117 {approx = true} : vector<8x1xf32> -> vector<8x1xf32>
    %124 = arith.mulf %117, %123 : vector<8x1xf32>
    %cst_48 = arith.constant 2.000000e+00 : f32
    %125 = vector.broadcast %cst_48 : f32 to vector<8x1xf32>
    %126 = arith.subf %125, %124 : vector<8x1xf32>
    %127 = arith.mulf %123, %126 : vector<8x1xf32>
    %128 = tpu.reciprocal %118 {approx = true} : vector<8x1xf32> -> vector<8x1xf32>
    %129 = arith.mulf %118, %128 : vector<8x1xf32>
    %cst_49 = arith.constant 2.000000e+00 : f32
    %130 = vector.broadcast %cst_49 : f32 to vector<8x1xf32>
    %131 = arith.subf %130, %129 : vector<8x1xf32>
    %132 = arith.mulf %128, %131 : vector<8x1xf32>
    %133 = tpu.reciprocal %119 {approx = true} : vector<8x1xf32> -> vector<8x1xf32>
    %134 = arith.mulf %119, %133 : vector<8x1xf32>
    %cst_50 = arith.constant 2.000000e+00 : f32
    %135 = vector.broadcast %cst_50 : f32 to vector<8x1xf32>
    %136 = arith.subf %135, %134 : vector<8x1xf32>
    %137 = arith.mulf %133, %136 : vector<8x1xf32>
    %138 = tpu.reciprocal %120 {approx = true} : vector<8x1xf32> -> vector<8x1xf32>
    %139 = arith.mulf %120, %138 : vector<8x1xf32>
    %cst_51 = arith.constant 2.000000e+00 : f32
    %140 = vector.broadcast %cst_51 : f32 to vector<8x1xf32>
    %141 = arith.subf %140, %139 : vector<8x1xf32>
    %142 = arith.mulf %138, %141 : vector<8x1xf32>
    %143 = tpu.reciprocal %121 {approx = true} : vector<8x1xf32> -> vector<8x1xf32>
    %144 = arith.mulf %121, %143 : vector<8x1xf32>
    %cst_52 = arith.constant 2.000000e+00 : f32
    %145 = vector.broadcast %cst_52 : f32 to vector<8x1xf32>
    %146 = arith.subf %145, %144 : vector<8x1xf32>
    %147 = arith.mulf %143, %146 : vector<8x1xf32>
    %148 = tpu.reciprocal %122 {approx = true} : vector<8x1xf32> -> vector<8x1xf32>
    %149 = arith.mulf %122, %148 : vector<8x1xf32>
    %cst_53 = arith.constant 2.000000e+00 : f32
    %150 = vector.broadcast %cst_53 : f32 to vector<8x1xf32>
    %151 = arith.subf %150, %149 : vector<8x1xf32>
    %152 = arith.mulf %148, %151 : vector<8x1xf32>
    %153 = arith.addf %117, %119 : vector<8x1xf32>
    %cst_54 = arith.constant 0.000000e+00 : f32
    %154 = vector.broadcast %cst_54 : f32 to vector<8x1xf32>
    %155 = arith.subf %154, %153 : vector<8x1xf32>
    %156 = arith.mulf %127, %137 : vector<8x1xf32>
    %157 = arith.mulf %155, %156 : vector<8x1xf32>
    %158 = arith.mulf %127, %132 : vector<8x1xf32>
    %159 = arith.mulf %119, %158 : vector<8x1xf32>
    %cst_55 = arith.constant 0.000000e+00 : f32
    %160 = vector.broadcast %cst_55 : f32 to vector<8x1xf32>
    %161 = arith.subf %160, %117 : vector<8x1xf32>
    %162 = arith.mulf %132, %137 : vector<8x1xf32>
    %163 = arith.mulf %161, %162 : vector<8x1xf32>
    %164 = arith.mulf %142, %152 : vector<8x1xf32>
    %165 = arith.mulf %121, %164 : vector<8x1xf32>
    %cst_56 = arith.constant 0.000000e+00 : f32
    %166 = vector.broadcast %cst_56 : f32 to vector<8x1xf32>
    %167 = arith.subf %166, %122 : vector<8x1xf32>
    %168 = arith.mulf %142, %147 : vector<8x1xf32>
    %169 = arith.mulf %167, %168 : vector<8x1xf32>
    %170 = arith.addf %121, %122 : vector<8x1xf32>
    %171 = arith.mulf %147, %152 : vector<8x1xf32>
    %172 = arith.mulf %170, %171 : vector<8x1xf32>
    %173 = arith.mulf %127, %137 : vector<8x1xf32>
    %cst_57 = arith.constant 2.000000e+00 : f32
    %174 = vector.broadcast %cst_57 : f32 to vector<8x1xf32>
    %175 = arith.mulf %174, %173 : vector<8x1xf32>
    %176 = arith.mulf %127, %132 : vector<8x1xf32>
    %cst_58 = arith.constant -2.000000e+00 : f32
    %177 = vector.broadcast %cst_58 : f32 to vector<8x1xf32>
    %178 = arith.mulf %177, %176 : vector<8x1xf32>
    %179 = arith.mulf %132, %137 : vector<8x1xf32>
    %cst_59 = arith.constant 2.000000e+00 : f32
    %180 = vector.broadcast %cst_59 : f32 to vector<8x1xf32>
    %181 = arith.mulf %180, %179 : vector<8x1xf32>
    %182 = arith.mulf %142, %152 : vector<8x1xf32>
    %cst_60 = arith.constant 2.000000e+00 : f32
    %183 = vector.broadcast %cst_60 : f32 to vector<8x1xf32>
    %184 = arith.mulf %183, %182 : vector<8x1xf32>
    %185 = arith.mulf %142, %147 : vector<8x1xf32>
    %cst_61 = arith.constant -2.000000e+00 : f32
    %186 = vector.broadcast %cst_61 : f32 to vector<8x1xf32>
    %187 = arith.mulf %186, %185 : vector<8x1xf32>
    %188 = arith.mulf %147, %152 : vector<8x1xf32>
    %cst_62 = arith.constant 2.000000e+00 : f32
    %189 = vector.broadcast %cst_62 : f32 to vector<8x1xf32>
    %190 = arith.mulf %189, %188 : vector<8x1xf32>
    %191 = tpu.iota {dimensions = array<i32: 1>} : vector<8x128xi32>
    %c0_i32_63 = arith.constant 0 : i32
    %192 = vector.broadcast %c0_i32_63 : i32 to vector<8x128xi32>
    %193 = arith.cmpi eq, %191, %192 : vector<8x128xi32>
    %c127_i32_64 = arith.constant 127 : i32
    %194 = vector.broadcast %c127_i32_64 : i32 to vector<8x128xi32>
    %195 = arith.cmpi eq, %191, %194 : vector<8x128xi32>
    %196 = arith.mulf %62, %72 : vector<8x128xf32>
    %c1_i32_65 = arith.constant 1 : i32
    %197 = tpu.dynamic_rotate %196 by %c1_i32_65 dim 1 : vector<8x128xf32>, i32 -> vector<8x128xf32>
    %c127_i32_66 = arith.constant 127 : i32
    %198 = tpu.dynamic_rotate %196 by %c127_i32_66 dim 1 : vector<8x128xf32>, i32 -> vector<8x128xf32>
    %c1_i32_67 = arith.constant 1 : i32
    %199 = tpu.dynamic_rotate %67 by %c1_i32_67 dim 1 : vector<8x128xf32>, i32 -> vector<8x128xf32>
    %c127_i32_68 = arith.constant 127 : i32
    %200 = tpu.dynamic_rotate %67 by %c127_i32_68 dim 1 : vector<8x128xf32>, i32 -> vector<8x128xf32>
    %201 = arith.mulf %96, %197 : vector<8x128xf32>
    %202 = arith.mulf %99, %196 : vector<8x128xf32>
    %203 = arith.addf %201, %202 : vector<8x128xf32>
    %204 = arith.mulf %101, %198 : vector<8x128xf32>
    %205 = arith.addf %203, %204 : vector<8x128xf32>
    %206 = vector.extract_strided_slice %196 {offsets = [0, 0], sizes = [8, 1], strides = [1, 1]} : vector<8x128xf32> to vector<8x1xf32>
    %207 = arith.mulf %157, %206 : vector<8x1xf32>
    %208 = vector.extract_strided_slice %196 {offsets = [0, 1], sizes = [8, 1], strides = [1, 1]} : vector<8x128xf32> to vector<8x1xf32>
    %209 = arith.mulf %159, %208 : vector<8x1xf32>
    %210 = arith.addf %207, %209 : vector<8x1xf32>
    %211 = vector.extract_strided_slice %196 {offsets = [0, 2], sizes = [8, 1], strides = [1, 1]} : vector<8x128xf32> to vector<8x1xf32>
    %212 = arith.mulf %163, %211 : vector<8x1xf32>
    %213 = arith.addf %210, %212 : vector<8x1xf32>
    %214 = vector.extract_strided_slice %196 {offsets = [0, 125], sizes = [8, 1], strides = [1, 1]} : vector<8x128xf32> to vector<8x1xf32>
    %215 = arith.mulf %165, %214 : vector<8x1xf32>
    %216 = vector.extract_strided_slice %196 {offsets = [0, 126], sizes = [8, 1], strides = [1, 1]} : vector<8x128xf32> to vector<8x1xf32>
    %217 = arith.mulf %169, %216 : vector<8x1xf32>
    %218 = arith.addf %215, %217 : vector<8x1xf32>
    %219 = vector.extract_strided_slice %196 {offsets = [0, 127], sizes = [8, 1], strides = [1, 1]} : vector<8x128xf32> to vector<8x1xf32>
    %220 = arith.mulf %172, %219 : vector<8x1xf32>
    %221 = arith.addf %218, %220 : vector<8x1xf32>
    %222 = vector.shape_cast %221 : vector<8x1xf32> to vector<8x1xf32>
    %223 = vector.broadcast %222 : vector<8x1xf32> to vector<8x128xf32>
    %224 = arith.select %195, %223, %205 : vector<8x128xi1>, vector<8x128xf32>
    %225 = vector.shape_cast %213 : vector<8x1xf32> to vector<8x1xf32>
    %226 = vector.broadcast %225 : vector<8x1xf32> to vector<8x128xf32>
    %227 = arith.select %193, %226, %224 : vector<8x128xi1>, vector<8x128xf32>
    %228 = arith.mulf %67, %67 : vector<8x128xf32>
    %229 = arith.mulf %199, %199 : vector<8x128xf32>
    %230 = arith.mulf %200, %200 : vector<8x128xf32>
    %231 = arith.mulf %96, %229 : vector<8x128xf32>
    %232 = arith.mulf %99, %228 : vector<8x128xf32>
    %233 = arith.addf %231, %232 : vector<8x128xf32>
    %234 = arith.mulf %101, %230 : vector<8x128xf32>
    %235 = arith.addf %233, %234 : vector<8x128xf32>
    %236 = vector.extract_strided_slice %228 {offsets = [0, 0], sizes = [8, 1], strides = [1, 1]} : vector<8x128xf32> to vector<8x1xf32>
    %237 = arith.mulf %157, %236 : vector<8x1xf32>
    %238 = vector.extract_strided_slice %228 {offsets = [0, 1], sizes = [8, 1], strides = [1, 1]} : vector<8x128xf32> to vector<8x1xf32>
    %239 = arith.mulf %159, %238 : vector<8x1xf32>
    %240 = arith.addf %237, %239 : vector<8x1xf32>
    %241 = vector.extract_strided_slice %228 {offsets = [0, 2], sizes = [8, 1], strides = [1, 1]} : vector<8x128xf32> to vector<8x1xf32>
    %242 = arith.mulf %163, %241 : vector<8x1xf32>
    %243 = arith.addf %240, %242 : vector<8x1xf32>
    %244 = vector.extract_strided_slice %228 {offsets = [0, 125], sizes = [8, 1], strides = [1, 1]} : vector<8x128xf32> to vector<8x1xf32>
    %245 = arith.mulf %165, %244 : vector<8x1xf32>
    %246 = vector.extract_strided_slice %228 {offsets = [0, 126], sizes = [8, 1], strides = [1, 1]} : vector<8x128xf32> to vector<8x1xf32>
    %247 = arith.mulf %169, %246 : vector<8x1xf32>
    %248 = arith.addf %245, %247 : vector<8x1xf32>
    %249 = vector.extract_strided_slice %228 {offsets = [0, 127], sizes = [8, 1], strides = [1, 1]} : vector<8x128xf32> to vector<8x1xf32>
    %250 = arith.mulf %172, %249 : vector<8x1xf32>
    %251 = arith.addf %248, %250 : vector<8x1xf32>
    %252 = vector.shape_cast %251 : vector<8x1xf32> to vector<8x1xf32>
    %253 = vector.broadcast %252 : vector<8x1xf32> to vector<8x128xf32>
    %254 = arith.select %195, %253, %235 : vector<8x128xi1>, vector<8x128xf32>
    %255 = vector.shape_cast %243 : vector<8x1xf32> to vector<8x1xf32>
    %256 = vector.broadcast %255 : vector<8x1xf32> to vector<8x128xf32>
    %257 = arith.select %193, %256, %254 : vector<8x128xi1>, vector<8x128xf32>
    %258 = arith.mulf %96, %199 : vector<8x128xf32>
    %259 = arith.mulf %99, %67 : vector<8x128xf32>
    %260 = arith.addf %258, %259 : vector<8x128xf32>
    %261 = arith.mulf %101, %200 : vector<8x128xf32>
    %262 = arith.addf %260, %261 : vector<8x128xf32>
    %263 = vector.extract_strided_slice %67 {offsets = [0, 0], sizes = [8, 1], strides = [1, 1]} : vector<8x128xf32> to vector<8x1xf32>
    %264 = arith.mulf %157, %263 : vector<8x1xf32>
    %265 = vector.extract_strided_slice %67 {offsets = [0, 1], sizes = [8, 1], strides = [1, 1]} : vector<8x128xf32> to vector<8x1xf32>
    %266 = arith.mulf %159, %265 : vector<8x1xf32>
    %267 = arith.addf %264, %266 : vector<8x1xf32>
    %268 = vector.extract_strided_slice %67 {offsets = [0, 2], sizes = [8, 1], strides = [1, 1]} : vector<8x128xf32> to vector<8x1xf32>
    %269 = arith.mulf %163, %268 : vector<8x1xf32>
    %270 = arith.addf %267, %269 : vector<8x1xf32>
    %271 = vector.extract_strided_slice %67 {offsets = [0, 125], sizes = [8, 1], strides = [1, 1]} : vector<8x128xf32> to vector<8x1xf32>
    %272 = arith.mulf %165, %271 : vector<8x1xf32>
    %273 = vector.extract_strided_slice %67 {offsets = [0, 126], sizes = [8, 1], strides = [1, 1]} : vector<8x128xf32> to vector<8x1xf32>
    %274 = arith.mulf %169, %273 : vector<8x1xf32>
    %275 = arith.addf %272, %274 : vector<8x1xf32>
    %276 = vector.extract_strided_slice %67 {offsets = [0, 127], sizes = [8, 1], strides = [1, 1]} : vector<8x128xf32> to vector<8x1xf32>
    %277 = arith.mulf %172, %276 : vector<8x1xf32>
    %278 = arith.addf %275, %277 : vector<8x1xf32>
    %279 = vector.shape_cast %278 : vector<8x1xf32> to vector<8x1xf32>
    %280 = vector.broadcast %279 : vector<8x1xf32> to vector<8x128xf32>
    %281 = arith.select %195, %280, %262 : vector<8x128xi1>, vector<8x128xf32>
    %282 = vector.shape_cast %270 : vector<8x1xf32> to vector<8x1xf32>
    %283 = vector.broadcast %282 : vector<8x1xf32> to vector<8x128xf32>
    %284 = arith.select %193, %283, %281 : vector<8x128xi1>, vector<8x128xf32>
    %285 = arith.mulf %106, %199 : vector<8x128xf32>
    %286 = arith.mulf %109, %67 : vector<8x128xf32>
    %287 = arith.addf %285, %286 : vector<8x128xf32>
    %288 = arith.mulf %110, %200 : vector<8x128xf32>
    %289 = arith.addf %287, %288 : vector<8x128xf32>
    %290 = vector.extract_strided_slice %67 {offsets = [0, 0], sizes = [8, 1], strides = [1, 1]} : vector<8x128xf32> to vector<8x1xf32>
    %291 = arith.mulf %175, %290 : vector<8x1xf32>
    %292 = vector.extract_strided_slice %67 {offsets = [0, 1], sizes = [8, 1], strides = [1, 1]} : vector<8x128xf32> to vector<8x1xf32>
    %293 = arith.mulf %178, %292 : vector<8x1xf32>
    %294 = arith.addf %291, %293 : vector<8x1xf32>
    %295 = vector.extract_strided_slice %67 {offsets = [0, 2], sizes = [8, 1], strides = [1, 1]} : vector<8x128xf32> to vector<8x1xf32>
    %296 = arith.mulf %181, %295 : vector<8x1xf32>
    %297 = arith.addf %294, %296 : vector<8x1xf32>
    %298 = vector.extract_strided_slice %67 {offsets = [0, 125], sizes = [8, 1], strides = [1, 1]} : vector<8x128xf32> to vector<8x1xf32>
    %299 = arith.mulf %184, %298 : vector<8x1xf32>
    %300 = vector.extract_strided_slice %67 {offsets = [0, 126], sizes = [8, 1], strides = [1, 1]} : vector<8x128xf32> to vector<8x1xf32>
    %301 = arith.mulf %187, %300 : vector<8x1xf32>
    %302 = arith.addf %299, %301 : vector<8x1xf32>
    %303 = vector.extract_strided_slice %67 {offsets = [0, 127], sizes = [8, 1], strides = [1, 1]} : vector<8x128xf32> to vector<8x1xf32>
    %304 = arith.mulf %190, %303 : vector<8x1xf32>
    %305 = arith.addf %302, %304 : vector<8x1xf32>
    %306 = vector.shape_cast %305 : vector<8x1xf32> to vector<8x1xf32>
    %307 = vector.broadcast %306 : vector<8x1xf32> to vector<8x128xf32>
    %308 = arith.select %195, %307, %289 : vector<8x128xi1>, vector<8x128xf32>
    %309 = vector.shape_cast %297 : vector<8x1xf32> to vector<8x1xf32>
    %310 = vector.broadcast %309 : vector<8x1xf32> to vector<8x128xf32>
    %311 = arith.select %193, %310, %308 : vector<8x128xi1>, vector<8x128xf32>
    %312 = tpu.reciprocal %62 {approx = true} : vector<8x128xf32> -> vector<8x128xf32>
    %313 = arith.mulf %62, %312 : vector<8x128xf32>
    %cst_69 = arith.constant 2.000000e+00 : f32
    %314 = vector.broadcast %cst_69 : f32 to vector<8x128xf32>
    %315 = arith.subf %314, %313 : vector<8x128xf32>
    %316 = arith.mulf %312, %315 : vector<8x128xf32>
    %317 = arith.mulf %227, %316 : vector<8x128xf32>
    %318 = tpu.reciprocal %33 {approx = true} : vector<8x128xf32> -> vector<8x128xf32>
    %319 = arith.mulf %33, %318 : vector<8x128xf32>
    %cst_70 = arith.constant 2.000000e+00 : f32
    %320 = vector.broadcast %cst_70 : f32 to vector<8x128xf32>
    %321 = arith.subf %320, %319 : vector<8x128xf32>
    %322 = arith.mulf %318, %321 : vector<8x128xf32>
    %323 = math.cos %57 : vector<8x128xf32>
    %cst_71 = arith.constant 6.674300e-11 : f32
    %324 = vector.broadcast %cst_71 : f32 to vector<8x128xf32>
    %325 = arith.mulf %324, %323 : vector<8x128xf32>
    %326 = arith.mulf %322, %322 : vector<8x128xf32>
    %327 = arith.mulf %325, %326 : vector<8x128xf32>
    %328 = arith.mulf %67, %284 : vector<8x128xf32>
    %329 = arith.subf %257, %328 : vector<8x128xf32>
    %330 = arith.mulf %284, %51 : vector<8x128xf32>
    %331 = arith.addf %311, %330 : vector<8x128xf32>
    %cst_72 = arith.constant -8.9475851E+16 : f32
    %332 = vector.broadcast %cst_72 : f32 to vector<8x128xf32>
    %333 = arith.mulf %332, %331 : vector<8x128xf32>
    %334 = arith.addf %329, %317 : vector<8x128xf32>
    %335 = arith.addf %334, %333 : vector<8x128xf32>
    %336 = arith.addf %335, %327 : vector<8x128xf32>
    %337 = arith.mulf %336, %336 : vector<8x128xf32>
    %338 = arith.cmpf one, %337, %337 : vector<8x128xf32>
    %cst_73 = arith.constant dense<true> : vector<8x128xi1>
    %339 = arith.xori %338, %cst_73 : vector<8x128xi1>
    %340 = vector.broadcast %27 : vector<8x1xi1> to vector<8x128xi1>
    %341 = arith.andi %339, %340 : vector<8x128xi1>
    %c0_74 = arith.constant 0 : index
    %c0_75 = arith.constant 0 : index
    %342 = vector.load %arg6[%c0_74, %c0_75] : memref<1x1xf32, #tpu.memory_space<vmem>>, vector<1x1xf32>
    %cst_76 = arith.constant 0.000000e+00 : f32
    %343 = vector.broadcast %cst_76 : f32 to vector<8x128xf32>
    %344 = arith.select %341, %337, %343 : vector<8x128xi1>, vector<8x128xf32>
    %cst_77 = arith.constant dense<0.000000e+00> : vector<8xf32>
    %345 = vector.multi_reduction <add>, %344, %cst_77 [1] : vector<8x128xf32> to vector<8xf32>
    %346 = vector.shape_cast %345 : vector<8xf32> to vector<8x1xf32>
    %cst_78 = arith.constant dense<0.000000e+00> : vector<1xf32>
    %347 = vector.multi_reduction <add>, %346, %cst_78 [0] : vector<8x1xf32> to vector<1xf32>
    %348 = vector.shape_cast %347 : vector<1xf32> to vector<1x1xf32>
    %349 = arith.addf %342, %348 : vector<1x1xf32>
    %c0_79 = arith.constant 0 : index
    %c0_80 = arith.constant 0 : index
    %350 = vector.load %arg6[%c0_79, %c0_80] : memref<1x1xf32, #tpu.memory_space<vmem>>, vector<1x1xf32>
    tpu.vector_store %arg6[%c0_79, %c0_80], %349 {strides = array<i32>} : memref<1x1xf32, #tpu.memory_space<vmem>>, vector<1x1xf32>,
    %c0_81 = arith.constant 0 : index
    %c0_82 = arith.constant 0 : index
    %351 = vector.load %arg7[%c0_81, %c0_82] : memref<1x1xf32, #tpu.memory_space<vmem>>, vector<1x1xf32>
    %cst_83 = arith.constant 1.000000e+00 : f32
    %cst_84 = arith.constant 0.000000e+00 : f32
    %352 = vector.broadcast %cst_83 : f32 to vector<8x128xf32>
    %353 = vector.broadcast %cst_84 : f32 to vector<8x128xf32>
    %354 = arith.select %341, %352, %353 : vector<8x128xi1>, vector<8x128xf32>
    %cst_85 = arith.constant dense<0.000000e+00> : vector<8xf32>
    %355 = vector.multi_reduction <add>, %354, %cst_85 [1] : vector<8x128xf32> to vector<8xf32>
    %356 = vector.shape_cast %355 : vector<8xf32> to vector<8x1xf32>
    %cst_86 = arith.constant dense<0.000000e+00> : vector<1xf32>
    %357 = vector.multi_reduction <add>, %356, %cst_86 [0] : vector<8x1xf32> to vector<1xf32>
    %358 = vector.shape_cast %357 : vector<1xf32> to vector<1x1xf32>
    %359 = arith.addf %351, %358 : vector<1x1xf32>
    %c0_87 = arith.constant 0 : index
    %c0_88 = arith.constant 0 : index
    %360 = vector.load %arg7[%c0_87, %c0_88] : memref<1x1xf32, #tpu.memory_space<vmem>>, vector<1x1xf32>
    tpu.vector_store %arg7[%c0_87, %c0_88], %359 {strides = array<i32>} : memref<1x1xf32, #tpu.memory_space<vmem>>, vector<1x1xf32>,
    %361 = arith.mulf %62, %67 : vector<8x128xf32>
    %362 = tpu.reciprocal %45 {approx = true} : vector<8x128xf32> -> vector<8x128xf32>
    %363 = arith.mulf %45, %362 : vector<8x128xf32>
    %cst_89 = arith.constant 2.000000e+00 : f32
    %364 = vector.broadcast %cst_89 : f32 to vector<8x128xf32>
    %365 = arith.subf %364, %363 : vector<8x128xf32>
    %366 = arith.mulf %362, %365 : vector<8x128xf32>
    %367 = arith.mulf %361, %366 : vector<8x128xf32>
    %cst_90 = arith.constant dense<0.000000e+00> : vector<8xf32>
    %368 = vector.multi_reduction <add>, %367, %cst_90 [1] : vector<8x128xf32> to vector<8xf32>
    %369 = vector.shape_cast %368 : vector<8xf32> to vector<8x1xf32>
    %cst_91 = arith.constant 7.812500e-03 : f32
    %370 = vector.broadcast %cst_91 : f32 to vector<8x1xf32>
    %371 = arith.mulf %369, %370 : vector<8x1xf32>
    %372 = vector.broadcast %371 : vector<8x1xf32> to vector<8x128xf32>
    %373 = arith.subf %367, %372 : vector<8x128xf32>
    %374 = arith.mulf %373, %373 : vector<8x128xf32>
    %cst_92 = arith.constant dense<0.000000e+00> : vector<8xf32>
    %375 = vector.multi_reduction <add>, %374, %cst_92 [1] : vector<8x128xf32> to vector<8xf32>
    %376 = vector.shape_cast %375 : vector<8xf32> to vector<8x1xf32>
    %cst_93 = arith.constant 0.00787401571 : f32
    %377 = vector.broadcast %cst_93 : f32 to vector<8x1xf32>
    %378 = arith.mulf %376, %377 : vector<8x1xf32>
    %379 = math.sqrt %378 : vector<8x1xf32>
    %c0_94 = arith.constant 0 : index
    %c0_95 = arith.constant 0 : index
    %380 = vector.load %arg8[%c0_94, %c0_95] : memref<1x1xf32, #tpu.memory_space<vmem>>, vector<1x1xf32>
    %cst_96 = arith.constant 0.000000e+00 : f32
    %381 = vector.broadcast %cst_96 : f32 to vector<8x1xf32>
    %382 = arith.select %27, %379, %381 : vector<8x1xi1>, vector<8x1xf32>
    %cst_97 = arith.constant dense<0.000000e+00> : vector<1xf32>
    %383 = vector.multi_reduction <add>, %382, %cst_97 [0] : vector<8x1xf32> to vector<1xf32>
    %384 = vector.shape_cast %383 : vector<1xf32> to vector<1x1xf32>
    %385 = arith.addf %380, %384 : vector<1x1xf32>
    %c0_98 = arith.constant 0 : index
    %c0_99 = arith.constant 0 : index
    %386 = vector.load %arg8[%c0_98, %c0_99] : memref<1x1xf32, #tpu.memory_space<vmem>>, vector<1x1xf32>
    tpu.vector_store %arg8[%c0_98, %c0_99], %385 {strides = array<i32>} : memref<1x1xf32, #tpu.memory_space<vmem>>, vector<1x1xf32>,
    %c1_i32_100 = arith.constant 1 : i32
    %387 = arith.cmpi eq, %arg0, %c1_i32_100 : i32
    %388 = arith.extui %387 : i1 to i32
    %c0_i32_101 = arith.constant 0 : i32
    %389 = arith.cmpi ne, %388, %c0_i32_101 : i32
    scf.if %389 {
      %c0_102 = arith.constant 0 : index
      %c0_103 = arith.constant 0 : index
      %390 = vector.load %arg5[%c0_102, %c0_103] : memref<1x1xf32, #tpu.memory_space<vmem>>, vector<1x1xf32>
      %cst_104 = arith.constant 7.38770686E-5 : f32
      %391 = vector.broadcast %cst_104 : f32 to vector<1x1xf32>
      %392 = arith.mulf %390, %391 : vector<1x1xf32>
      %c0_105 = arith.constant 0 : index
      %c0_106 = arith.constant 0 : index
      %393 = vector.load %arg6[%c0_105, %c0_106] : memref<1x1xf32, #tpu.memory_space<vmem>>, vector<1x1xf32>
      %c0_107 = arith.constant 0 : index
      %c0_108 = arith.constant 0 : index
      %394 = vector.load %arg7[%c0_107, %c0_108] : memref<1x1xf32, #tpu.memory_space<vmem>>, vector<1x1xf32>
      %395 = arith.divf %393, %394 : vector<1x1xf32>
      %396 = math.sqrt %395 : vector<1x1xf32>
      %c0_109 = arith.constant 0 : index
      %c0_110 = arith.constant 0 : index
      %397 = vector.load %arg8[%c0_109, %c0_110] : memref<1x1xf32, #tpu.memory_space<vmem>>, vector<1x1xf32>
      %cst_111 = arith.constant 0.0833333358 : f32
      %398 = vector.broadcast %cst_111 : f32 to vector<1x1xf32>
      %399 = arith.mulf %397, %398 : vector<1x1xf32>
      %400 = math.sqrt %399 : vector<1x1xf32>
      %cst_112 = arith.constant 1.000000e+00 : f32
      %401 = vector.broadcast %cst_112 : f32 to vector<1x1xf32>
      %402 = arith.mulf %396, %401 : vector<1x1xf32>
      %cst_113 = arith.constant 1.000000e+00 : f32
      %403 = vector.broadcast %cst_113 : f32 to vector<1x1xf32>
      %404 = arith.mulf %400, %403 : vector<1x1xf32>
      %405 = arith.addf %402, %404 : vector<1x1xf32>
      %406 = math.log %405 : vector<1x1xf32>
      %cst_114 = arith.constant 0.434294492 : f32
      %407 = vector.broadcast %cst_114 : f32 to vector<1x1xf32>
      %408 = arith.mulf %406, %407 : vector<1x1xf32>
      %409 = math.log %392 : vector<1x1xf32>
      %cst_115 = arith.constant 0.434294492 : f32
      %410 = vector.broadcast %cst_115 : f32 to vector<1x1xf32>
      %411 = arith.mulf %409, %410 : vector<1x1xf32>
      %412 = arith.subf %408, %411 : vector<1x1xf32>
      %413 = arith.cmpf olt, %392, %405 : vector<1x1xf32>
      %414 = arith.fptosi %412 : vector<1x1xf32> to vector<1x1xi32>
      %415 = arith.sitofp %414 : vector<1x1xi32> to vector<1x1xf32>
      %cst_116 = arith.constant 0.000000e+00 : f32
      %416 = vector.broadcast %cst_116 : f32 to vector<1x1xf32>
      %417 = arith.select %413, %415, %416 : vector<1x1xi1>, vector<1x1xf32>
      %cst_117 = arith.constant 2.30258512 : f32
      %418 = vector.broadcast %cst_117 : f32 to vector<1x1xf32>
      %419 = arith.mulf %417, %418 : vector<1x1xf32>
      %420 = math.exp %419 : vector<1x1xf32>
      %421 = arith.mulf %392, %420 : vector<1x1xf32>
      %422 = arith.addf %421, %405 : vector<1x1xf32>
      %423 = tpu.iota {dimensions = array<i32: 1>} : vector<1x8xi32>
      %c0_i32_118 = arith.constant 0 : i32
      %424 = vector.broadcast %c0_i32_118 : i32 to vector<1x8xi32>
      %425 = arith.cmpi eq, %423, %424 : vector<1x8xi32>
      %cst_119 = arith.constant 0.000000e+00 : f32
      %426 = vector.shape_cast %422 : vector<1x1xf32> to vector<1x1xf32>
      %427 = vector.broadcast %426 : vector<1x1xf32> to vector<1x8xf32>
      %428 = vector.broadcast %cst_119 : f32 to vector<1x8xf32>
      %429 = arith.select %425, %427, %428 : vector<1x8xi1>, vector<1x8xf32>
      %c1_i32_120 = arith.constant 1 : i32
      %430 = vector.broadcast %c1_i32_120 : i32 to vector<1x8xi32>
      %431 = arith.cmpi eq, %423, %430 : vector<1x8xi32>
      %cst_121 = arith.constant 0.000000e+00 : f32
      %432 = vector.shape_cast %421 : vector<1x1xf32> to vector<1x1xf32>
      %433 = vector.broadcast %432 : vector<1x1xf32> to vector<1x8xf32>
      %434 = vector.broadcast %cst_121 : f32 to vector<1x8xf32>
      %435 = arith.select %431, %433, %434 : vector<1x8xi1>, vector<1x8xf32>
      %436 = arith.addf %429, %435 : vector<1x8xf32>
      %c2_i32 = arith.constant 2 : i32
      %437 = vector.broadcast %c2_i32 : i32 to vector<1x8xi32>
      %438 = arith.cmpi eq, %423, %437 : vector<1x8xi32>
      %cst_122 = arith.constant 0.000000e+00 : f32
      %439 = vector.shape_cast %405 : vector<1x1xf32> to vector<1x1xf32>
      %440 = vector.broadcast %439 : vector<1x1xf32> to vector<1x8xf32>
      %441 = vector.broadcast %cst_122 : f32 to vector<1x8xf32>
      %442 = arith.select %438, %440, %441 : vector<1x8xi1>, vector<1x8xf32>
      %443 = arith.addf %436, %442 : vector<1x8xf32>
      %c3_i32 = arith.constant 3 : i32
      %444 = vector.broadcast %c3_i32 : i32 to vector<1x8xi32>
      %445 = arith.cmpi eq, %423, %444 : vector<1x8xi32>
      %cst_123 = arith.constant 0.000000e+00 : f32
      %446 = vector.shape_cast %392 : vector<1x1xf32> to vector<1x1xf32>
      %447 = vector.broadcast %446 : vector<1x1xf32> to vector<1x8xf32>
      %448 = vector.broadcast %cst_123 : f32 to vector<1x8xf32>
      %449 = arith.select %445, %447, %448 : vector<1x8xi1>, vector<1x8xf32>
      %450 = arith.addf %443, %449 : vector<1x8xf32>
      %c4_i32 = arith.constant 4 : i32
      %451 = vector.broadcast %c4_i32 : i32 to vector<1x8xi32>
      %452 = arith.cmpi eq, %423, %451 : vector<1x8xi32>
      %cst_124 = arith.constant 0.000000e+00 : f32
      %453 = vector.shape_cast %396 : vector<1x1xf32> to vector<1x1xf32>
      %454 = vector.broadcast %453 : vector<1x1xf32> to vector<1x8xf32>
      %455 = vector.broadcast %cst_124 : f32 to vector<1x8xf32>
      %456 = arith.select %452, %454, %455 : vector<1x8xi1>, vector<1x8xf32>
      %457 = arith.addf %450, %456 : vector<1x8xf32>
      %c5_i32 = arith.constant 5 : i32
      %458 = vector.broadcast %c5_i32 : i32 to vector<1x8xi32>
      %459 = arith.cmpi eq, %423, %458 : vector<1x8xi32>
      %cst_125 = arith.constant 0.000000e+00 : f32
      %460 = vector.shape_cast %400 : vector<1x1xf32> to vector<1x1xf32>
      %461 = vector.broadcast %460 : vector<1x1xf32> to vector<1x8xf32>
      %462 = vector.broadcast %cst_125 : f32 to vector<1x8xf32>
      %463 = arith.select %459, %461, %462 : vector<1x8xi1>, vector<1x8xf32>
      %464 = arith.addf %457, %463 : vector<1x8xf32>
      %c0_126 = arith.constant 0 : index
      %c0_127 = arith.constant 0 : index
      %465 = vector.load %arg4[%c0_126, %c0_127] : memref<1x8xf32, #tpu.memory_space<vmem>>, vector<1x8xf32>
      tpu.vector_store %arg4[%c0_126, %c0_127], %464 {strides = array<i32>} : memref<1x8xf32, #tpu.memory_space<vmem>>, vector<1x8xf32>,
    } else {
    }
    return
  }
  func.func @transform_0(%arg0: i32) -> (i32, i32, i32) {
    %c0_i32 = arith.constant 0 : i32
    %c0_i32_0 = arith.constant 0 : i32
    %c0_i32_1 = arith.constant 0 : i32
    return %c0_i32, %arg0, %c0_i32_0 : i32, i32, i32
  }
  func.func @transform_1(%arg0: i32) -> (i32, i32) {
    %c0_i32 = arith.constant 0 : i32
    %c0_i32_0 = arith.constant 0 : i32
    return %arg0, %c0_i32 : i32, i32
  }
  func.func @transform_2(%arg0: i32) -> (i32, i32) {
    %c0_i32 = arith.constant 0 : i32
    %c0_i32_0 = arith.constant 0 : i32
    return %arg0, %c0_i32 : i32, i32
  }
  func.func @transform_3(%arg0: i32) -> (i32, i32) {
    %c0_i32 = arith.constant 0 : i32
    %c0_i32_0 = arith.constant 0 : i32
    %c0_i32_1 = arith.constant 0 : i32
    return %c0_i32, %c0_i32_0 : i32, i32
  }
}

</mosaic_0001>

<bundles_post_ra>
// kernel: tpu_custom_call.1
= control target key start
LH: loop header
LB: loop body
LE: loop exit
PB: predicated region body
PF: predicated region fallthrough
CT: control target
= control target key end

     0   :  { %s2168_s0 = inlined_call_operand.hbm [shape: f32[5,16,128], index: 0, kind: input, shape index: {}]   ;;  %s2169_s1 = inlined_call_operand.hbm [shape: f32[16,1128], index: 1, kind: input, shape index: {}]   ;;  %s2170_s2 = inlined_call_operand.hbm [shape: f32[16,1128], index: 2, kind: input, shape index: {}]   ;;  %s2171_s3 = inlined_call_operand.hbm [shape: f32[1,8], index: 3, kind: output, shape index: {}]  }
   0x1   :  { %2173 = sst [smem:[#allocation17_spill]] %s2168_s0 }
   0x2   :  { %2174 = sst [smem:[#allocation18_spill]] %s2169_s1 }
   0x3   :  { %8 = vsyncpa [#allocation7], 0 }
   0x4   :  { %10 = vsyncpa [#allocation7 + $0x1], 0 }
   0x5   :  { %11 = vsyncpa [#allocation10], 0 }
   0x6   :  { %13 = vsyncpa [#allocation10 + $0x1], 0 }
   0x7   :  { %14 = vsyncpa [#allocation8], 0  ;;  %s1546_s12 = smov 0   ;;  %s1548_s13 = smov 0  }
   0x8   :  { %s1550_s14 = smov 0   ;;  %s1552_s15 = smov 0  }
   0x9 LB: > { %s1565_s16 = sadd.s32 4294967295, %s1491_s15   ;;  %s1568_s17 = sadd.s32 1, %s1491_s15   ;;  %s1491_s15 = sphi %s1552_s15, %s2196_s15   ;;  %s1487_s14 = sphi %s1550_s14, %s2195_s14   ;;  %s1483_s13 = sphi %s1548_s13, %s2194_s13   ;;  %s1479_s12 = sphi %s1546_s12, %s2193_s12  }
   0xa   : > { %s24_s18 = ssub.s32 %s1491_s15, %s1568_s17  ;;  %s27_s19 = sadd.s32 1, %s1487_s14 }
   0xb   : > { %p25_p0 = scmp.eq.s32.totalorder %s24_s18, 0  ;;  %p34_p1 = scmp.ne.s32.totalorder %s1487_s14, %s1483_s13 }
   0xc   : > { %p35_p2 = scmp.eq.s32.totalorder %s1491_s15, 0  ;;  %p40_p3 = scmp.ne.s32.totalorder %s1483_s13, %s1479_s12 }
   0xd   : > { %s1578_s20 = scalar_select %p25_p0, %s1487_s14, %s27_s19  }
   0xe   : > { %p36_p4 = por %p35_p2, %p34_p1  ;;  %p41_p5 = scmp.eq.s32.totalorder %s1565_s16, 0 }
   0xf   : > { %2175 = sst [smem:[#allocation16_spill]] %s1578_s20  ;;  %p1231_p6 = scmp.lt.s32.totalorder %s1491_s15, 2 }
  0x10   : > { %p1582_p7 = por %p41_p5, %p40_p3  ;;  %s1587_s22 = sand.u32 1, %s1487_s14  }
  0x11   : > { %s1198_s23 = smul.u32 40, %s1587_s22  ;;  %p1590_p8 = pnand %p1231_p6, %p36_p4 }
  0x12   : > { %s2176_s21 = scalar_select %p1582_p7, 1, 0 }
  0x13   : > { %s157_s25 = sand.u32 1, %s1491_s15   ;;  %s141_s26 = scalar_lea.vmem [#allocation6], %s1198_s23 }
  0x14   : > { %s147_s27 = sshll.u32 %s141_s26, 4  ;;  %s1199_s28 = smul.u32 72, %s1587_s22  ;;  %s1595_s27 = int_to_ptr.vmem [resolvable:$true] %s147_s27 }
  0x15   : > { %s1200_s29 = smul.u32 1152, %s1491_s15  ;;  %p1173_p9 = scmp.ge.s32.totalorder %s1491_s15, 1 }
  0x16   : > { %p193_p10 = scmp.lt.s32.totalorder %s1491_s15, 3  ;;  %s2178_s1 = sld [smem:[#allocation18_spill]] }
  0x17   : > { %s161_s6 = scalar_lea.vmem [#allocation9], %s1199_s28  ;;  %s1614_s9 = scalar_lea.sflag [#allocation10], %s157_s25 }
  0x18   : > { %s169_s7 = sshll.u32 %s161_s6, 4  ;;  %p1610_p11 = pnand %p1173_p9, %p193_p10  ;;  %s170_s7 = int_to_ptr.vmem [resolvable:$true] %s169_s7 }
  0x19   : > { %p1620_p13 = pneg %p1590_p8 }
  0x1a   : > { %s2179_s8 = scalar_select %p1610_p11, 1, 0 }
  0x1c   : > { %s1606_s5 = scalar_lea.hbm %s2178_s1, %s1200_s29  ;;  %s1346_s19 = scalar_lea.hbm %s2178_s1, 2304 }
  0x1d   : > { %s1341_s10 = scalar_lea.hbm %s1606_s5, 1152  ;;  %p1347_p2 = scmp.lt.s32.totalorder %s1606_s5, %s2178_s1 }
  0x1e   : > { %p1342_p12 = scmp.ne.s32.totalorder %s1606_s5, %s1341_s10  ;;  %p1348_p3 = scmp.lt.s32.totalorder %s1346_s19, %s1341_s10 }
  0x20   : > { %p1344_p0 = pnand %p1620_p13, %p1342_p12  ;;  %p1349_p4 = por %p1348_p3, %p1347_p2 }
  0x22   : > { %p1345_p1 = pneg %p1344_p0 }
  0x24   : > { %p1350_p5 = pnand %p1349_p4, %p1345_p1 }
  0x26   : > { %1353 = shalt.err (!%p1350_p5)
}
  0x27   : > { %s1354_s25 = scalar_lea.vmem %s170_s7, 1152  ;;  %s1493_s30 = smov [#allocation9]  }
  0x28   : > { %p1355_p6 = scmp.ne.s32.totalorder %s170_s7, %s1354_s25  ;;  %s1359_s4 = sshll.u32 %s1493_s30, 4  ;;  %s1360_s4 = int_to_ptr.vmem [resolvable:$false] %s1359_s4 }
  0x29   : > { %s1361_s6 = scalar_lea.vmem %s1360_s4, 2304  ;;  %p1362_p12 = scmp.lt.s32.totalorder %s170_s7, %s1360_s4 }
  0x2a   : > { %p1357_p9 = pnand %p1355_p6, %p1620_p13  ;;  %p1363_p0 = scmp.lt.s32.totalorder %s1361_s6, %s1354_s25 }
  0x2c   : > { %p1358_p10 = pneg %p1357_p9  ;;  %p1364_p7 = por %p1363_p0, %p1362_p12 }
  0x2e   : > { %p1365_p11 = pnand %p1364_p7, %p1358_p10 }
  0x30   : > { %1368 = shalt.err (!%p1365_p11)
}
  0x31   : > { %1227 = dma.hbm_to_vmem [thread:$0]  (!%p1590_p8), %s1606_s5, 1152, %s170_s7, %s1614_s9  }
  0x32   : > { %s1170_s10 = sshll.u32 %s1491_s15, 7  ;;  %s2181_s0 = sld [smem:[#allocation17_spill]] }
  0x33   : > { %s138_s23 = scalar_lea.sflag [#allocation7], %s1587_s22 }
  0x38   : > { %s1643_s19 = scalar_lea.hbm %s2181_s0, %s1170_s10  ;;  %s1374_s4 = scalar_lea.hbm %s2181_s0, 1280 }
  0x39   : > { %s1369_s26 = scalar_lea.hbm %s1643_s19, 640  ;;  %p1375_p2 = scmp.lt.s32.totalorder %s1643_s19, %s2181_s0 }
  0x3a   : > { %p1370_p7 = scmp.ne.s32.totalorder %s1643_s19, %s1369_s26  ;;  %p1376_p3 = scmp.lt.s32.totalorder %s1374_s4, %s1369_s26 }
  0x3c   : > { %p1372_p11 = pnand %p1370_p7, %p1620_p13  ;;  %p1377_p4 = por %p1376_p3, %p1375_p2 }
  0x3e   : > { %p1373_p1 = pneg %p1372_p11 }
  0x40   : > { %p1378_p5 = pnand %p1377_p4, %p1373_p1 }
  0x42   : > { %1381 = shalt.err (!%p1378_p5)
}
  0x43   : > { %s1382_s6 = scalar_lea.vmem %s1595_s27, 640  ;;  %s1494_s10 = smov [#allocation6]  }
  0x44   : > { %p1383_p6 = scmp.ne.s32.totalorder %s1595_s27, %s1382_s6  ;;  %s1387_s12 = sshll.u32 %s1494_s10, 4  ;;  %s1388_s12 = int_to_ptr.vmem [resolvable:$false] %s1387_s12 }
  0x45   : > { %s1389_s18 = scalar_lea.vmem %s1388_s12, 1280  ;;  %p1390_p12 = scmp.lt.s32.totalorder %s1595_s27, %s1388_s12 }
  0x46   : > { %p1385_p9 = pnand %p1383_p6, %p1620_p13  ;;  %p1391_p0 = scmp.lt.s32.totalorder %s1389_s18, %s1382_s6 }
  0x48   : > { %p1386_p10 = pneg %p1385_p9  ;;  %p1392_p7 = por %p1391_p0, %p1390_p12 }
  0x4a   : > { %p1393_p11 = pnand %p1392_p7, %p1386_p10 }
  0x4c   : > { %1396 = shalt.err (!%p1393_p11)
}
  0x4d   : > { %s1495_s26 = smov 256   ;;  %s1496_s25 = smov 128  }
  0x4e   : > { %s1497_s30 = smov 8   ;;  %s186_s7 = scalar_lea.hbm %s2170_s2, %s1200_s29 }
  0x4f   : > { %1224 = dma.hbm_to_vmem [thread:$0]  (!%p1590_p8), %s1643_s19, 640, %s1595_s27, %s138_s23, %s1495_s26, %s1496_s25, %s1497_s30  }
  0x50   : > { %s180_s6 = scalar_lea.vmem [#allocation11], %s1199_s28  ;;  %s1397_s12 = scalar_lea.hbm %s186_s7, 1152 }
  0x51   : > { %s188_s10 = sshll.u32 %s180_s6, 4  ;;  %p1398_p1 = scmp.ne.s32.totalorder %s186_s7, %s1397_s12  ;;  %s189_s10 = int_to_ptr.vmem [resolvable:$true] %s188_s10 }
  0x52   : > { %s1402_s1 = scalar_lea.hbm %s2170_s2, 2304  ;;  %p1403_p4 = scmp.lt.s32.totalorder %s186_s7, %s2170_s2 }
  0x53   : > { %p1400_p2 = pnand %p1398_p1, %p1620_p13  ;;  %p1404_p5 = scmp.lt.s32.totalorder %s1402_s1, %s1397_s12 }
  0x55   : > { %p1401_p3 = pneg %p1400_p2  ;;  %p1405_p6 = por %p1404_p5, %p1403_p4 }
  0x57   : > { %p1406_p9 = pnand %p1405_p6, %p1401_p3 }
  0x59   : > { %1409 = shalt.err (!%p1406_p9)
}
  0x5a   : > { %s1410_s15 = scalar_lea.vmem %s189_s10, 1152  ;;  %s1498_s22 = smov [#allocation11]  }
  0x5b   : > { %p1411_p10 = scmp.ne.s32.totalorder %s189_s10, %s1410_s15  ;;  %s1415_s28 = sshll.u32 %s1498_s22, 4  ;;  %s1416_s28 = int_to_ptr.vmem [resolvable:$false] %s1415_s28 }
  0x5c   : > { %s1417_s29 = scalar_lea.vmem %s1416_s28, 2304  ;;  %p1418_p7 = scmp.lt.s32.totalorder %s189_s10, %s1416_s28 }
  0x5d   : > { %p1413_p12 = pnand %p1411_p10, %p1620_p13  ;;  %p1419_p11 = scmp.lt.s32.totalorder %s1417_s29, %s1410_s15 }
  0x5f   : > { %p1414_p0 = pneg %p1413_p12  ;;  %p1420_p1 = por %p1419_p11, %p1418_p7 }
  0x61   : > { %p1421_p2 = pnand %p1420_p1, %p1414_p0 }
  0x63   : > { %1424 = shalt.err (!%p1421_p2)
}
  0x64   : > { %1230 = dma.hbm_to_vmem [thread:$0]  (!%p1590_p8), %s186_s7, 1152, %s189_s10, %s1614_s9  }
  0x65   : > { %p2182_p3 = scmp.ne.s32.totalorder %s2179_s8, 0 }
  0x66   : > { %s199_s0 = sand.u32 (!%p2182_p3), 1, %s1483_s13   ;;  %p2183_p13 = scmp.ne.s32.totalorder (!%p2182_p3), %s2176_s21, 0 }
  0x67   : > { %197 = sbr.rel (%p2182_p3) target bundleno = 1399 (0x577), region = 32  ;;  %s200_s20 = scalar_lea.sflag (!%p2182_p3), [#allocation7], %s199_s0 }
  0x68   : > { %s1203_s1 = smul.u32 (!%p2182_p3), 40, %s199_s0 }
  0x6a   : > { %s1691_s11 = scalar_lea.vmem (!%p2182_p3), [#allocation6], %s1203_s1 }
  0x6c   : > { %1466 = dma.done.wait (%p2183_p13), %s200_s20, 640  }
  0x6d   : > { %1468 = vsyncadd (%p2183_p13), %s200_s20, 4294966656  ;;  %s208_s24 = sand.u32 1, %s1565_s16   ;;  %s1204_s19 = smul.u32 72, %s199_s0 }
  0x6e   : > { %s209_s9 = scalar_lea.sflag [#allocation10], %s208_s24 }
  0x6f   : > { %s1698_s23 = scalar_lea.vmem [#allocation9], %s1204_s19 }
  0x70   : > { %1470 = dma.done.wait (%p2183_p13), %s209_s9, 2304  }
  0x71   : > { %1472 = vsyncadd (%p2183_p13), %s209_s9, 4294964992  ;;  %s1704_s8 = scalar_lea.vmem [#allocation11], %s1204_s19  ;;  %p1174_p8 = scmp.ne.s32.totalorder %s1565_s16, 0 }
  0x73   : > { %252 = sbr.rel (%p1174_p8) target bundleno = 123 (0x7b), region = 48 }
  0x78   : > { %vm253_vm0 = vcmask 0   ;;  %v1499_v0 = vmov 0.0  }
  0x79   : > { %254 = vst.msk [vmem:[#allocation2] sm:$0x1] %vm253_vm0, %v1499_v0  ;;  %255 = vst.msk [vmem:[#allocation3] sm:$0x1] %vm253_vm0, %v1499_v0 }
  0x7a   : > { %256 = vst.msk [vmem:[#allocation4] sm:$0x1] %vm253_vm0, %v1499_v0  ;;  %257 = vst.msk [vmem:[#allocation5] sm:$0x1] %vm253_vm0, %v1499_v0 }
  0x7b PF: > { %v1185_v1 = vld [vmem:[%s1691_s11 + $0x8] sm:$0xff]  ;;  %s1500_s26 = smov 1   ;;  %s1501_s21 = smov 2   ;;  %v1725_v15 = vld [vmem:[%s1698_s23 + $0x20] sm:$0xff]  ;;  %v1732_v18 = vld [vmem:[%s1698_s23 + $0x28] sm:$0xff]  ;;  %v1509_v33 = vmov 127  }
  0x7c   : > { %v372_v2 = vmul.f32 6.264e+10, %v1185_v1  ;;  %s1502_s25 = smov 127   ;;  %v1729_v17 = vmul.f32 150000.0, %v1725_v15  ;;  %s1503_s30 = smov 17   ;;  %1296 = vset.pattern.permute.xlu1 %v1509_v33  ;;  %1299 = vset.pattern.permute.xlu0 %v1509_v33 }
  0x7d   : > { %v1737_v19 = vmul.f32 150000.0, %v1732_v18  ;;  %s1504_s4 = smov 8   ;;  %s1505_s5 = smov 18   ;;  %v1186_v21 = vld [vmem:[%s1691_s11 + $0x10] sm:$0xff]  ;;  %v1762_v30 = vld [vmem:[%s1698_s23 + $0x38] sm:$0xff] }
  0x7e   : > { %v1708_v3 = vadd.f32 1.392e+10, %v372_v2  ;;  %s1506_s7 = smov 16   ;;  %s1507_s6 = smov 15   ;;  %v396_v31 = vmul.f32 800000.0, %v1762_v30  ;;  %v1775_v41 = vld [vmem:[%s1698_s23 + $0x8] sm:$0xff]  ;;  %v1815_v1 = vmul.f32 %v1729_v17, %v1729_v17 }
  0x7f   : > { %s1508_s10 = smov 120   ;;  %v1781_v44 = vadd.f32 0.5, %v1775_v41  ;;  %v1784_v45 = vld [vmem:[%s1698_s23 + $0x10] sm:$0xff]  ;;  %vm513_vm1 = vcmask 64512   ;;  %v1789_v49 = vld [vmem:[%s1698_s23 + $0x40] sm:$0xff]  ;;  %s1510_s12 = smov 9  }
  0x80   : > { %434 = vrot.lane.b32.xlu0 %v1708_v3, %s1500_s26  ;;  %v398_v34 = vadd.f32 100000.0, %v396_v31  ;;  %v1792_v50 = vadd.f32 0.5, %v1784_v45  ;;  %v397_v53 = vmul.f32 800000.0, %v1789_v49  ;;  %vm501_vm2 = vcmask 130048   ;;  %s1512_s18 = smov 10   ;;  %s1513_s27 = smov 7  }
  0x81   : > { %s1514_s15 = smov 112   ;;  %s1184_s22 = sshll.u32 %s1565_s16, 3 }
  0x82   : > { %v399_v60 = vadd.f32 100000.0, %v397_v53  ;;  %p1193_p4 = scmp.ne.s32.totalorder %s1565_s16, 1 }
  0x84   : > { %438 = vrot.lane.b32.xlu0 %v1708_v3, %s1501_s21 }
  0xf2   : > { %v435_v4 = vpop.permute.xlu0 %434 }
  0xf3   : > { %v1714_v5 = vsub.f32 %v1708_v3, %v435_v4 }
  0xf5   : > { %1303 = vrcp.f32 %v1714_v5 }
  0xf6   : > { %v439_v6 = vpop.permute.xlu0 %438 }
  0xf7   : > { %v1718_v7 = vsub.f32 %v1708_v3, %v439_v6 }
  0xf9   : > { %1305 = vrcp.f32 %v1718_v7 }
  0xfa   : > { %1307 = vrcp.f32 %v1186_v21 }
 0x102   : > { %v1304_v8 = vpop.eup %1303 }
 0x103   : > { %v443_v9 = vmul.f32 %v1304_v8, %v1714_v5 }
 0x105   : > { %v444_v10 = vsub.f32 2.0, %v443_v9 }
 0x106   : > { %v1306_v11 = vpop.eup %1305 }
 0x107   : > { %v445_v12 = vmul.f32 %v1304_v8, %v444_v10  ;;  %v447_v13 = vmul.f32 %v1306_v11, %v1718_v7  ;;  %v1308_v22 = vpop.eup %1307  ;;  %v484_v8 = vsub.f32 0.0, %v1718_v7  ;;  %v486_v10 = vadd.f32 %v1718_v7, %v1714_v5 }
 0x108   : > { %v900_v23 = vmul.f32 %v1308_v22, %v1186_v21 }
 0x109   : > { %463 = vrot.lane.b32.xlu1 %v445_v12, %s1502_s25  ;;  %v448_v14 = vsub.f32 2.0, %v447_v13 }
 0x10a   : > { %v901_v26 = vsub.f32 2.0, %v900_v23  ;;  %v1511_v23 = vmov 1  }
 0x10b   : > { %v449_v16 = vmul.f32 %v1306_v11, %v448_v14 }
 0x10c   : > { %v902_v28 = vmul.f32 %v1308_v22, %v901_v26 }
 0x10d   : > { %457 = vrot.lane.b32.xlu1 %v449_v16, %s1502_s25  ;;  %v1745_v20 = vmul.f32 %v449_v16, %v445_v12 }
 0x10f   : > { %v1837_v13 = vmul.f32 %v486_v10, %v1745_v20 }
 0x111   : > { %637 = vrot.lane.b32.xlu1 %v1729_v17, %s1503_s30 }
 0x115   : > { %892 = vrot.lane.b32.xlu1 %v1737_v19, %s1504_s4 }
 0x119   : > { %451 = vrot.lane.b32.xlu1 %v1718_v7, %s1502_s25 }
 0x11d   : > { %652 = vrot.lane.b32.xlu1 %v1737_v19, %s1505_s5 }
 0x121   : > { %475 = vrot.lane.b32.xlu1 %v1745_v20, %s1502_s25 }
 0x125   : > { %524 = vrot.lane.b32.xlu1 %v1737_v19, %s1506_s7 }
 0x129   : > { %647 = vrot.lane.b32.xlu1 %v1729_v17, %s1507_s6 }
 0x12d   : > { %400 = vrot.lane.b32.xlu1 %v1708_v3, %s1500_s26 }
 0x17b   : > { %v464_v24 = vpop.permute.xlu1 %463 }
 0x17c   : > { %v466_v25 = vmul.f32 %v464_v24, %v445_v12 }
 0x17e   : > { %468 = vrot.lane.b32.xlu0 %v466_v25, %s1500_s26  ;;  %v489_v58 = vmul.f32 -2.0, %v466_v25  ;;  %v472_v25 = vsub.f32 0.0, %v1714_v5 }
 0x17f   : > { %v458_v27 = vpop.permute.xlu1 %457 }
 0x180   : > { %v460_v37 = vmul.f32 %v458_v27, %v445_v12 }
 0x182   : > { %890 = vrot.lane.b32.xlu0 %v1729_v17, %s1504_s4  ;;  %v488_v59 = vmul.f32 2.0, %v460_v37 }
 0x183   : > { %v1759_v29 = vpop.permute.xlu1 %637 }
 0x186   : > { %904 = vrot.lane.b32.xlu0 %v902_v28, %s1508_s10 }
 0x187   : > { %v893_v32 = vpop.permute.xlu1 %892 }
 0x18a   : > { %656 = vrot.lane.b32.xlu0 %v1737_v19, %s1503_s30 }
 0x18b   : > { %v452_v35 = vpop.permute.xlu1 %451 }
 0x18c   : > { %v454_v36 = vadd.f32 %v452_v35, %v1714_v5 }
 0x18e   : > { %v455_v38 = vsub.f32 0.0, %v454_v36  ;;  %497 = vrot.lane.b32.xlu0 %v398_v34, %s1506_s7 }
 0x18f   : > { %v653_v40 = vpop.permute.xlu1 %652 }
 0x190   : > { %v1771_v39 = vmul.f32 %v460_v37, %v455_v38 }
 0x192   : > { %480 = vrot.lane.b32.xlu0 %v460_v37, %s1500_s26  ;;  %v640_v28 = vmul.f32 %v1759_v29, %v1771_v39 }
 0x193   : > { %v476_v47 = vpop.permute.xlu1 %475 }
 0x194   : > { %v1845_v27 = vmul.f32 %v476_v47, %v472_v25 }
 0x197   : > { %v1803_v57 = vpop.permute.xlu1 %524 }
 0x198   : > { %v692_v0 = vmul.f32 %v1803_v57, %v489_v58  ;;  %v662_v21 = vmul.f32 %v1803_v57, %v1837_v13 }
 0x19b   : > { %v648_v24 = vpop.permute.xlu1 %647 }
 0x19c   : > { %v650_v34 = vmul.f32 %v648_v24, %v1845_v27 }
 0x19f   : > { %v401_v26 = vpop.permute.xlu1 %400 }
 0x1a0   : > { %v1850_v31 = vsub.f32 %v1708_v3, %v401_v26 }
 0x1a2   : > { %1309 = vrcp.f32 %v1850_v31 }
 0x1f0   : > { %v469_v42 = vpop.permute.xlu0 %468 }
 0x1f1   : > { %v1778_v43 = vmul.f32 %v469_v42, %v1718_v7  ;;  %v1829_v11 = vmul.f32 %v484_v8, %v469_v42 }
 0x1f3   : > { %v641_v46 = vmul.f32 %v1759_v29, %v1778_v43 }
 0x1f4   : > { %v891_v48 = vpop.permute.xlu0 %890 }
 0x1f5   : > { %v897_v51 = vmul.f32 %v891_v48, %v1781_v44  ;;  %643 = vrot.lane.b32.xlu0 %v641_v46, %s1502_s25  ;;  %v894_v52 = vsel %vm513_vm1, %v891_v48, %v893_v32 }
 0x1f6   : > { %v898_v55 = vmul.f32 %v894_v52, %v1792_v50 }
 0x1f8   : > { %v905_v54 = vpop.permute.xlu0 %904 }
 0x1f9   : > { %v1799_v56 = vmul.f32 %v905_v54, %v897_v51  ;;  %522 = vrot.lane.b32.xlu0 %v1729_v17, %s1506_s7  ;;  %v1807_v62 = vmul.f32 %v905_v54, %v898_v55  ;;  %v1310_v54 = vpop.eup %1309 }
 0x1fb   : > { %911 = vrot.lane.b32.xlu1 %v1799_v56, %s1504_s4 }
 0x1fc   : > { %v657_v61 = vpop.permute.xlu0 %656 }
 0x1fd   : > { %v691_v63 = vmul.f32 %v657_v61, %v488_v59  ;;  %402 = vrot.lane.b32.xlu0 %v1708_v3, %s1502_s25  ;;  %v659_v14 = vmul.f32 %v657_v61, %v1829_v11 }
 0x1ff   : > { %499 = vrot.lane.b32.xlu1 %v399_v60, %s1506_s7  ;;  %v1817_v2 = vadd.f32 %v692_v0, %v691_v63 }
 0x200   : > { %v498_v4 = vpop.permute.xlu0 %497 }
 0x201   : > { %v1820_v6 = vmul.f32 %v498_v4, %v1781_v44  ;;  %913 = vrot.lane.b32.xlu0 %v1807_v62, %s1504_s4 }
 0x203   : > { %593 = vrot.lane.b32.xlu1 %v1815_v1, %s1503_s30 }
 0x204   : > { %v481_v9 = vpop.permute.xlu0 %480 }
 0x205   : > { %v1832_v12 = vmul.f32 %v481_v9, %v1714_v5  ;;  %537 = vrot.lane.b32.xlu0 %v1820_v6, %s1510_s12  ;;  %v681_v5 = vmul.f32 %v1759_v29, %v488_v59 }
 0x207   : > { %v655_v16 = vmul.f32 %v653_v40, %v1832_v12 }
 0x209   : > { %v660_v7 = vadd.f32 %v659_v14, %v655_v16 }
 0x20b   : > { %v663_v22 = vadd.f32 %v662_v21, %v660_v7 }
 0x20d   : > { %666 = vperm.xlu1 %1296, %v663_v22  }
 0x211   : > { %1297 = vset.pattern.permute.xlu1 %v1511_v23 }
 0x267   : > { %v644_v32 = vpop.permute.xlu0 %643 }
 0x268   : > { %v646_v35 = vadd.f32 %v644_v32, %v640_v28 }
 0x26a   : > { %v651_v36 = vadd.f32 %v650_v34, %v646_v35  ;;  %v490_v34 = vmul.f32 2.0, %v1745_v20 }
 0x26b   : > { %v523_v37 = vpop.permute.xlu0 %522 }
 0x26c   : > { %v683_v38 = vmul.f32 %v523_v37, %v489_v58  ;;  %672 = vperm.xlu1 %1297, %v651_v36   ;;  %v1857_v40 = vsel %vm501_vm2, %v523_v37, %v1803_v57  ;;  %v694_v35 = vmul.f32 %v1803_v57, %v490_v34  ;;  %v685_v36 = vmul.f32 %v523_v37, %v490_v34 }
 0x26d   : > { %v912_v42 = vpop.permute.xlu1 %911  ;;  %528 = vrot.lane.b32.xlu0 %v1857_v40, %s1500_s26 }
 0x26e   : > { %v1861_v46 = vadd.f32 %v683_v38, %v681_v5 }
 0x26f   : > { %v403_v47 = vpop.permute.xlu0 %402 }
 0x270   : > { %v405_v48 = vsub.f32 %v403_v47, %v1708_v3  ;;  %v406_v51 = vsub.f32 %v403_v47, %v401_v26  ;;  %1298 = vset.pattern.permute.xlu1 %v1509_v33  ;;  %v577_v3 = vmul.f32 %v1737_v19, %v1737_v19  ;;  %v408_v33 = vmul.f32 %v1310_v54, %v1850_v31 }
 0x271   : > { %v500_v52 = vpop.permute.xlu1 %499  ;;  %530 = vrot.lane.b32.xlu0 %v1857_v40, %s1502_s25 }
 0x272   : > { %1311 = vrcp.f32 %v405_v48  ;;  %v502_v29 = vsel %vm501_vm2, %v498_v4, %v500_v52  ;;  %v409_v55 = vsub.f32 2.0, %v408_v33  ;;  %v430_v21 = vsub.f32 0.0, %v406_v51 }
 0x273   : > { %1313 = vrcp.f32 %v406_v51  ;;  %v506_v53 = vmul.f32 %v502_v29, %v1792_v50  ;;  %v914_v4 = vpop.permute.xlu0 %913  ;;  %v422_v20 = vsub.f32 %v405_v48, %v1850_v31 }
 0x274   : > { %v410_v63 = vmul.f32 %v1310_v54, %v409_v55  ;;  %v915_v28 = vsel %vm513_vm1, %v912_v42, %v914_v4  ;;  %v419_v42 = vsub.f32 0.0, %v405_v48  ;;  %1315 = vrcp.f32 %v1781_v44 }
 0x275   : > { %552 = vrot.lane.b32.xlu1 %v506_v53, %s1512_s18  ;;  %v1892_v5 = vpop.permute.xlu1 %593  ;;  %1317 = vrcp.f32 %v1792_v50 }
 0x276   : > { %v597_v38 = vmul.f32 %v1892_v5, %v1778_v43 }
 0x277   : > { %v1876_v7 = vpop.permute.xlu0 %537 }
 0x278   : > { %v541_v24 = vmul.f32 %v1876_v7, %v1778_v43 }
 0x279   : > { %556 = vrot.lane.b32.xlu1 %v506_v53, %s1510_s12 }
 0x27d   : > { %608 = vrot.lane.b32.xlu1 %v577_v3, %s1505_s5 }
 0x27f   : > { %v1312_v58 = vpop.eup %1311 }
 0x280   : > { %v1314_v59 = vpop.eup %1313  ;;  %v412_v60 = vmul.f32 %v1312_v58, %v405_v48 }
 0x281   : > { %v416_v61 = vmul.f32 %v1314_v59, %v406_v51  ;;  %612 = vrot.lane.b32.xlu1 %v577_v3, %s1503_s30  ;;  %v361_v51 = vlaneseq }
 0x282   : > { %v413_v0 = vsub.f32 2.0, %v412_v60 }
 0x283   : > { %v417_v8 = vsub.f32 2.0, %v416_v61  ;;  %v1909_v43 = vand.u32 127, %v361_v51 }
 0x284   : > { %v414_v9 = vmul.f32 %v1312_v58, %v413_v0 }
 0x285   : > { %511 = vrot.lane.b32.xlu1 %v506_v53, %s1504_s4  ;;  %v418_v10 = vmul.f32 %v1314_v59, %v417_v8  ;;  %vm494_vm3 = vcmp.eq.s32.totalorder %v1909_v43, 127  ;;  %vm493_vm4 = vcmp.eq.s32.totalorder %v1909_v43, 0 }
 0x286   : > { %v423_v14 = vmul.f32 %v414_v9, %v410_v63 }
 0x287   : > { %v420_v47 = vmul.f32 %v418_v10, %v410_v63  ;;  %v425_v52 = vmul.f32 %v418_v10, %v414_v9 }
 0x288   : > { %v427_v16 = vmul.f32 2.0, %v423_v14  ;;  %v1901_v57 = vmul.f32 %v423_v14, %v422_v20  ;;  %v667_v55 = vpop.permute.xlu1 %666  ;;  %v1316_v20 = vpop.eup %1315 }
 0x289   : > { %585 = vrot.lane.b32.xlu1 %v577_v3, %s1506_s7  ;;  %v1914_v3 = vmul.f32 %v425_v52, %v1850_v31 }
 0x28a   : > { %v428_v22 = vmul.f32 %v427_v16, %v418_v10  ;;  %v633_v54 = vmul.f32 %v1857_v40, %v1901_v57 }
 0x28c   : > { %v431_v25 = vmul.f32 %v430_v21, %v428_v22  ;;  %v429_v26 = vmul.f32 %v428_v22, %v405_v48  ;;  %v432_v33 = vmul.f32 %v428_v22, %v1850_v31 }
 0x28d   : > { %543 = vrot.lane.b32.xlu1 %v541_v24, %s1502_s25 }
 0x28e   : > { %v677_v32 = vmul.f32 %v1857_v40, %v431_v25 }
 0x290   : > { %917 = vadd.xlane.f32.xlu0 %v915_v28 }
 0x291   : > { %547 = vrot.lane.b32.xlu1 %v1820_v6, %s1513_s27 }
 0x295   : > { %603 = vrot.lane.b32.xlu1 %v1815_v1, %s1507_s6 }
 0x299   : > { %509 = vrot.lane.b32.xlu1 %v1820_v6, %s1504_s4  ;;  %v1899_v6 = vmul.f32 %v420_v47, %v419_v42 }
 0x29d   : > { %696 = vrot.lane.b32.xlu1 %v694_v35, %s1502_s25 }
 0x2a1   : > { %687 = vrot.lane.b32.xlu1 %v685_v36, %s1502_s25 }
 0x2a6   : > { %599 = vrot.lane.b32.xlu0 %v597_v38, %s1502_s25 }
 0x2df   : > { %v1903_v37 = vpop.permute.xlu0 %528 }
 0x2e0   : > { %v632_v29 = vmul.f32 %v1903_v37, %v1899_v6  ;;  %v676_v53 = vmul.f32 %v1903_v37, %v429_v26 }
 0x2e2   : > { %v678_v48 = vadd.f32 %v677_v32, %v676_v53  ;;  %v634_v59 = vadd.f32 %v633_v54, %v632_v29 }
 0x2e3   : > { %v1917_v58 = vpop.permute.xlu0 %530 }
 0x2e4   : > { %v635_v60 = vmul.f32 %v1917_v58, %v1914_v3  ;;  %v679_v61 = vmul.f32 %v1917_v58, %v432_v33  ;;  %v540_v33 = vmul.f32 %v1876_v7, %v1771_v39  ;;  %v596_v7 = vmul.f32 %v1892_v5, %v1771_v39 }
 0x2e6   : > { %v636_v63 = vadd.f32 %v635_v60, %v634_v59  ;;  %v1923_v0 = vadd.f32 %v679_v61, %v678_v48 }
 0x2e7   : > { %v673_v40 = vpop.permute.xlu1 %672 }
 0x2e8   : > { %v669_v31 = vsel %vm494_vm3, %v667_v55, %v636_v63 }
 0x2e9   : > { %v1930_v4 = vsel %vm493_vm4, %v673_v40, %v669_v31 }
 0x2ea   : > { %840 = vrot.lane.b32.xlu1 %v1930_v4, %s1514_s15 }
 0x2eb   : > { %v553_v8 = vpop.permute.xlu1 %552 }
 0x2ec   : > { %v555_v42 = vmul.f32 %v553_v8, %v1832_v12  ;;  %v1515_v8 = vmov 126  }
 0x2ee   : > { %583 = vrot.lane.b32.xlu1 %v1815_v1, %s1506_s7 }
 0x2ef   : > { %v557_v9 = vpop.permute.xlu1 %556 }
 0x2f0   : > { %v559_v34 = vmul.f32 %v557_v9, %v1829_v11 }
 0x2f3   : > { %v609_v10 = vpop.permute.xlu1 %608 }
 0x2f4   : > { %v611_v47 = vmul.f32 %v609_v10, %v1832_v12  ;;  %v1318_v10 = vpop.eup %1317 }
 0x2f7   : > { %v613_v14 = vpop.permute.xlu1 %612 }
 0x2f8   : > { %v615_v35 = vmul.f32 %v613_v14, %v1829_v11  ;;  %v560_v11 = vadd.f32 %v559_v34, %v555_v42 }
 0x2fa   : > { %v616_v48 = vadd.f32 %v615_v35, %v611_v47 }
 0x2fb   : > { %v512_v16 = vpop.permute.xlu1 %511 }
 0x2fc   : > { %v562_v52 = vmul.f32 %v512_v16, %v1837_v13 }
 0x2ff   : > { %v1935_v21 = vpop.permute.xlu1 %585 }
 0x300   : > { %v618_v29 = vmul.f32 %v1935_v21, %v1837_v13  ;;  %v1960_v13 = vld [vmem:[%s1691_s11 + $0x20] sm:$0xff] }
 0x301   : > { %v736_v31 = vand.u32 2139095040, %v1960_v13  ;;  %v733_v42 = vand.u32 2147483647, %v1960_v13 }
 0x302   : > { %v619_v12 = vadd.f32 %v618_v29, %v616_v48  ;;  %v1519_v29 = vmov 683565275  }
 0x303   : > { %v544_v22 = vpop.permute.xlu1 %543 }
 0x304   : > { %v546_v60 = vadd.f32 %v544_v22, %v540_v33 }
 0x307   : > { %v548_v24 = vpop.permute.xlu1 %547 }
 0x308   : > { %v550_v55 = vmul.f32 %v548_v24, %v1845_v27 }
 0x30a   : > { %v551_v63 = vadd.f32 %v550_v55, %v546_v60 }
 0x30b   : > { %v604_v25 = vpop.permute.xlu1 %603 }
 0x30c   : > { %v606_v22 = vmul.f32 %v604_v25, %v1845_v27 }
 0x30f   : > { %v510_v26 = vpop.permute.xlu1 %509 }
 0x310   : > { %v1938_v28 = vsel %vm513_vm1, %v510_v26, %v512_v16  ;;  %v737_v16 = vshrl.u32 %v736_v31, 23 }
 0x311   : > { %516 = vrot.lane.b32.xlu0 %v1938_v28, %s1500_s26 }
 0x312   : > { %v1189_v26 = vadd.s32 4294967169, %v737_v16  ;;  %v268_v16 = vld [vmem:[%s1704_s8 + $0x8] sm:$0xff] }
 0x313   : > { %v697_v59 = vpop.permute.xlu1 %696 }
 0x314   : > { %v699_v40 = vadd.f32 %v697_v59, %v1817_v2  ;;  %v715_v2 = vmul.f32 %v1318_v10, %v1792_v50  ;;  %v740_v59 = vand.u32 8388607, %v733_v42 }
 0x316   : > { %v717_v5 = vsub.f32 2.0, %v715_v2 }
 0x317   : > { %v688_v39 = vpop.permute.xlu1 %687 }
 0x318   : > { %v719_v34 = vmul.f32 %v1318_v10, %v717_v5  ;;  %v269_v5 = vld [vmem:[%s1704_s8 + $0x10] sm:$0xff] }
 0x319   : > { %v918_v32 = vpop.xlane.xlu0 %917 }
 0x31a   : > { %v919_v1 = vmul.f32 0.0078125, %v918_v32  ;;  %v690_v32 = vadd.f32 %v688_v39, %v1861_v46 }
 0x31c   : > { %v920_v36 = vsub.f32 %v1799_v56, %v919_v1  ;;  %v921_v38 = vsub.f32 %v1807_v62, %v919_v1  ;;  %v714_v56 = vmul.f32 %v1316_v20, %v1781_v44  ;;  %v563_v62 = vadd.f32 %v562_v52, %v560_v11 }
 0x31d   : > { %v600_v44 = vpop.permute.xlu0 %599  ;;  %v743_v1 = vadd.s32 1, %v1189_v26  ;;  %v1518_v52 = vmov 1326507024  }
 0x31e   : > { %v922_v53 = vmul.f32 %v920_v36, %v920_v36  ;;  %v923_v54 = vmul.f32 %v921_v38, %v921_v38  ;;  %v716_v61 = vsub.f32 2.0, %v714_v56  ;;  %v602_v14 = vadd.f32 %v600_v44, %v596_v7  ;;  %v258_v7 = vld [vmem:[%s1698_s23] sm:$0xff] }
 0x31f   : > { %vm744_vm5 = vcmp.gt.s32.totalorder %v743_v1, 0  ;;  %v1516_v36 = vmov 2102212464   ;;  %v1517_v38 = vmov 920167782   ;;  %v741_v44 = vor.u32 8388608, %v740_v59 }
 0x320   : > { %928 = vrot.lane.b32.xlu0 %v923_v54, %s1504_s4  ;;  %926 = vrot.lane.b32.xlu1 %v922_v53, %s1504_s4  ;;  %v718_v9 = vmul.f32 %v1316_v20, %v716_v61  ;;  %v607_v24 = vadd.f32 %v606_v22, %v602_v14  ;;  %v745_v27 = vsel %vm744_vm5, %v743_v1, 0  ;;  %v1520_v54 = vmov 2475754826  }
 0x321   : > { %v747_v25 = vand.u32 31, %v745_v27  ;;  %v1976_v47 = vshrl.u32 %v745_v27, 5  ;;  %v1521_v56 = vmov 2131351028  }
 0x323   : > { %v748_v35 = vsub.s32 32, %v747_v25  ;;  %v759_v50 = vshll.u32 %v1516_v36, %v747_v25  ;;  %v762_v20 = vshll.u32 %v1517_v38, %v747_v25  ;;  %v750_v53 = vshll.u32 %v1519_v29, %v747_v25 }
 0x324   : > { %622 = vperm.xlu0 %1299, %v619_v12   ;;  %566 = vperm.xlu1 %1298, %v563_v62   ;;  %v753_v48 = vshll.u32 %v1520_v54, %v747_v25  ;;  %v756_v12 = vshll.u32 %v1521_v56, %v747_v25  ;;  %vm768_vm6 = vcmp.lt.s32.totalorder %v1976_v47, 4  ;;  %vm765_vm7 = vcmp.lt.s32.totalorder %v1976_v47, 1 }
 0x325   : > { %v763_v46 = vshrl.u32 %v1518_v52, %v748_v35  ;;  %v751_v11 = vshrl.u32 %v1520_v54, %v748_v35  ;;  %v754_v62 = vshrl.u32 %v1521_v56, %v748_v35  ;;  %v757_v33 = vshrl.u32 %v1516_v36, %v748_v35  ;;  %v270_v52 = vld [vmem:[%s1704_s8 + $0x18] sm:$0xff] }
 0x326   : > { %vm767_vm8 = vcmp.lt.s32.totalorder %v1976_v47, 3  ;;  %vm766_vm9 = vcmp.lt.s32.totalorder %v1976_v47, 2 }
 0x327   : > { %v764_v60 = vor.u32 %v763_v46, %v762_v20  ;;  %v752_v61 = vor.u32 %v751_v11, %v750_v53  ;;  %v578_v53 = vmul.f32 %v1903_v37, %v1903_v37 }
 0x328   : > { %1301 = vset.pattern.permute.xlu0 %v1511_v23  ;;  %1300 = vset.pattern.permute.xlu1 %v1515_v8 }
 0x329   : > { %572 = vperm.xlu0 %1301, %v551_v63   ;;  %702 = vperm.xlu1 %1300, %v699_v40   ;;  %v755_v63 = vor.u32 %v754_v62, %v753_v48  ;;  %v758_v40 = vor.u32 %v757_v33, %v756_v12  ;;  %v778_v8 = vsel %vm768_vm6, %v764_v60, 1326507024  ;;  %v271_v12 = vld [vmem:[%s1704_s8 + $0x20] sm:$0xff] }
 0x32b   : > { %v773_v10 = vsel %vm765_vm7, %v752_v61, %v755_v63  ;;  %v777_v22 = vsel %vm765_vm7, %v755_v63, %v758_v40  ;;  %v770_v27 = vsel %vm768_vm6, %v758_v40, 2102212464 }
 0x32d   : > { %518 = vrot.lane.b32.xlu1 %v1938_v28, %s1502_s25  ;;  %722 = vrot.lane.b32.xlu0 %v718_v9, %s1504_s4  ;;  %v267_v9 = vld [vmem:[%s1704_s8] sm:$0xff] }
 0x32e   : > { %1302 = vset.pattern.permute.xlu1 %v1511_v23  ;;  %v760_v23 = vshrl.u32 %v1517_v38, %v748_v35  ;;  %v276_v26 = vsub.f32 %v258_v7, %v267_v9 }
 0x330   : > { %v761_v55 = vor.u32 %v760_v23, %v759_v50  ;;  %v278_v50 = vsub.f32 %v1784_v45, %v269_v5  ;;  %v285_v38 = vand.u32 2147483647, %v276_v26  ;;  %v771_v45 = vsel %vm767_vm8, %v755_v63, %v770_v27 }
 0x331   : > { %628 = vperm.xlu1 %1302, %v607_v24   ;;  %v1999_v24 = vshll.u32 %v741_v44, 8  ;;  %v579_v63 = vmul.f32 %v1917_v58, %v1917_v58 }
 0x332   : > { %v774_v31 = vsel %vm768_vm6, %v761_v55, 920167782  ;;  %v779_v2 = vsel %vm767_vm8, %v761_v55, %v778_v8  ;;  %v287_v48 = vand.u32 2147483647, %v278_v50  ;;  %v305_v56 = vmul.f32 0.5, %v278_v50 }
 0x333   : > { %v775_v14 = vsel %vm767_vm8, %v758_v40, %v774_v31  ;;  %v780_v1 = vsel %vm766_vm9, %v777_v22, %v779_v2  ;;  %v1175_v59 = vadd.f32 -0.5, %v285_v38  ;;  %vm2030_vm10 = vcmp.lt.f32.partialorder %v285_v38, 1.0 }
 0x334   : > { %v776_v39 = vsel %vm766_vm9, %v773_v10, %v775_v14  ;;  %v2016_v23 = vmul.u32.u64.low %v1999_v24, %v780_v1  ;;  %v2017_v20 = vmul.u32.u64.high %v1999_v24, %v780_v1, %v2016_v23  ;;  %v272_v10 = vld [vmem:[%s1704_s8 + $0x28] sm:$0xff]  ;;  %v314_v14 = vmul.f32 %v305_v56, %v278_v50 }
 0x335   : > { %708 = vperm.xlu1 %1302, %v690_v32   ;;  %v277_v32 = vsub.f32 %v1775_v41, %v268_v16  ;;  %v2010_v25 = vmul.u32.u64.low %v1999_v24, %v776_v39  ;;  %v2011_v36 = vmul.u32.u64.high %v1999_v24, %v776_v39, %v2010_v25  ;;  %v261_v41 = vld [vmem:[%s1698_s23 + $0x18] sm:$0xff]  ;;  %v1177_v58 = vadd.f32 -0.5, %v287_v48  ;;  %v273_v23 = vld [vmem:[%s1704_s8 + $0x30] sm:$0xff] }
 0x336   : > { %v279_v11 = vsub.f32 %v261_v41, %v270_v52  ;;  %v580_v22 = vmul.f32 %v578_v53, %v1899_v6  ;;  %vm2056_vm13 = vcmp.lt.f32.partialorder %v287_v48, 1.0  ;;  %v281_v1 = vsub.f32 %v1732_v18, %v272_v10  ;;  %v274_v53 = vld [vmem:[%s1704_s8 + $0x38] sm:$0xff] }
 0x337   : > { %v286_v46 = vand.u32 2147483647, %v277_v32  ;;  %v791_v8 = vadd.s32 1, %v2011_v36  ;;  %vm790_vm12 = vc.u32 %v2017_v20, %v2010_v25  ;;  %vm347_vm8 = vcmask 850944  }
 0x338   : > { %v306_v7 = vmul.f32 0.5, %v279_v11 }
 0x339   : > { %724 = vrot.lane.b32.xlu1 %v719_v34, %s1504_s4  ;;  %v749_v34 = vshrl.u32 %v1519_v29, %v748_v35  ;;  %v303_v35 = vmul.f32 0.5, %v276_v26  ;;  %v304_v29 = vmul.f32 0.5, %v277_v32  ;;  %v1176_v60 = vadd.f32 -0.5, %v286_v46 }
 0x33a   : > { %vm2034_vm11 = vcmp.lt.f32.partialorder %v286_v46, 1.0  ;;  %v315_v41 = vmul.f32 %v306_v7, %v279_v11  ;;  %v332_v46 = vsel %vm2056_vm13, %v314_v14, %v1177_v58 }
 0x33b   : > { %v769_v54 = vsel %vm765_vm7, %v749_v34, %v752_v61  ;;  %v312_v33 = vmul.f32 %v303_v35, %v276_v26  ;;  %v313_v55 = vmul.f32 %v304_v29, %v277_v32  ;;  %v591_v26 = vmul.f32 %v579_v63, %v1914_v3 }
 0x33c   : > { %v772_v44 = vsel %vm766_vm9, %v769_v54, %v771_v45  ;;  %v792_v32 = vsel %vm790_vm12, %v791_v8, %v2011_v36  ;;  %v290_v36 = vand.u32 2147483647, %v281_v1  ;;  %v308_v54 = vmul.f32 0.5, %v281_v1 }
 0x33d   : > { %v330_v47 = vsel %vm2030_vm10, %v312_v33, %v1175_v59  ;;  %v331_v16 = vsel %vm2034_vm11, %v313_v55, %v1176_v60  ;;  %v788_v5 = vmul.u32 %v1999_v24, %v772_v44  ;;  %vm735_vm10 = vcmp.lt.s32.totalorder %v1960_v13, 0 }
 0x33e   : > { %v340_v50 = vadd.f32 %v331_v16, %v330_v47  ;;  %v317_v60 = vmul.f32 %v308_v54, %v281_v1  ;;  %vm299_vm0 = vcmp.lt.f32.partialorder %v290_v36, 1.0  ;;  %vm2086_vm11 = vcmp.le.f32.partialorder %v733_v42, 0.7853982 }
 0x33f   : > { %v793_v18 = vadd.s32 %v792_v32, %v788_v5 }
 0x340   : > { %v341_v29 = vadd.f32 %v340_v50, %v332_v46 }
 0x341   : > { %v794_v55 = vadd.s32 536870912, %v793_v18 }
 0x343   : > { %v2075_v44 = vshrl.u32 %v794_v55, 30  ;;  %v1187_v55 = vld [vmem:[%s1691_s11 + $0x18] sm:$0xff] }
 0x345   : > { %v796_v14 = vshll.u32 %v2075_v44, 30 }
 0x347   : > { %v797_v2 = vsub.s32 %v793_v18, %v796_v14  ;;  %v819_v14 = vsub.s32 4, %v2075_v44 }
 0x349   : > { %v799_v32 = vsub.s32 0, %v797_v2 }
 0x35c   : > { %v841_v62 = vpop.permute.xlu1 %840 }
 0x35d   : > { %v843_v40 = vmul.f32 %v841_v62, %v1729_v17  ;;  %v844_v37 = vmul.f32 %v841_v62, %v1737_v19  ;;  %v280_v17 = vsub.f32 %v1725_v15, %v271_v12  ;;  %v288_v19 = vand.u32 2147483647, %v279_v11  ;;  %v275_v62 = vld [vmem:[%s1704_s8 + $0x40] sm:$0xff] }
 0x35e   : > { %v283_v11 = vsub.f32 %v1762_v30, %v274_v53  ;;  %v284_v31 = vsub.f32 %v1789_v49, %v275_v62 }
 0x35f   : > { %849 = vrot.lane.b32.xlu1 %v844_v37, %s1506_s7  ;;  %847 = vrot.lane.b32.xlu0 %v843_v40, %s1506_s7  ;;  %v289_v34 = vand.u32 2147483647, %v280_v17  ;;  %v307_v27 = vmul.f32 0.5, %v280_v17  ;;  %v1178_v52 = vadd.f32 -0.5, %v288_v19  ;;  %vm297_vm14 = vcmp.lt.f32.partialorder %v288_v19, 1.0 }
 0x360   : > { %v584_v9 = vpop.permute.xlu1 %583  ;;  %v1180_v40 = vadd.f32 -0.5, %v290_v36  ;;  %v292_v61 = vand.u32 2147483647, %v283_v11  ;;  %v310_v8 = vmul.f32 0.5, %v283_v11  ;;  %v311_v30 = vmul.f32 0.5, %v284_v31 }
 0x361   : > { %v587_v15 = vsel %vm501_vm2, %v584_v9, %v1935_v21  ;;  %v264_v21 = vld [vmem:[%s1698_s23 + $0x30] sm:$0xff]  ;;  %v316_v48 = vmul.f32 %v307_v27, %v280_v17  ;;  %v1179_v56 = vadd.f32 -0.5, %v289_v34  ;;  %v333_v45 = vsel %vm297_vm14, %v315_v41, %v1178_v52 }
 0x362   : > { %v589_v39 = vmul.f32 %v587_v15, %v1901_v57  ;;  %v282_v24 = vsub.f32 %v264_v21, %v273_v23  ;;  %vm298_vm15 = vcmp.lt.f32.partialorder %v289_v34, 1.0  ;;  %v342_v33 = vadd.f32 %v341_v29, %v333_v45 }
 0x363   : > { %v334_v37 = vsel %vm298_vm15, %v316_v48, %v1179_v56  ;;  %v335_v7 = vsel %vm299_vm0, %v317_v60, %v1180_v40  ;;  %v293_v9 = vand.u32 2147483647, %v284_v31  ;;  %v319_v58 = vmul.f32 %v310_v8, %v283_v11 }
 0x364   : > { %v590_v38 = vadd.f32 %v589_v39, %v580_v22  ;;  %v291_v12 = vand.u32 2147483647, %v282_v24  ;;  %v309_v59 = vmul.f32 0.5, %v282_v24  ;;  %v343_v63 = vadd.f32 %v342_v33, %v334_v37 }
 0x365   : > { %v1182_v47 = vadd.f32 -0.5, %v292_v61  ;;  %vm301_vm6 = vcmp.lt.f32.partialorder %v292_v61, 1.0  ;;  %v320_v49 = vmul.f32 %v311_v30, %v284_v31  ;;  %v1183_v22 = vadd.f32 -0.5, %v293_v9  ;;  %v367_v31 = vld [vmem:[%s1691_s11] sm:$0xff] }
 0x366   : > { %v2069_v35 = vadd.f32 %v591_v26, %v590_v38  ;;  %v318_v17 = vmul.f32 %v309_v59, %v282_v24  ;;  %v1181_v19 = vadd.f32 -0.5, %v291_v12  ;;  %vm300_vm5 = vcmp.lt.f32.partialorder %v291_v12, 1.0 }
 0x367   : > { %v344_v10 = vadd.f32 %v343_v63, %v335_v7  ;;  %vm302_vm7 = vcmp.lt.f32.partialorder %v293_v9, 1.0  ;;  %v337_v26 = vsel %vm301_vm6, %v319_v58, %v1182_v47  ;;  %v1190_v27 = vmin.u32 %v799_v32, %v797_v2 }
 0x368   : > { %v336_v16 = vsel %vm300_vm5, %v318_v17, %v1181_v19  ;;  %v338_v39 = vsel %vm302_vm7, %v320_v49, %v1183_v22  ;;  %v789_v36 = vadd.s32 %v2010_v25, %v2017_v20  ;;  %v379_v60 = vmul.f32 1.7241378e-11, %v1187_v55 }
 0x369   : > { %v345_v15 = vadd.f32 %v344_v10, %v336_v16  ;;  %v348_v1 = vsel %vm347_vm8, %v338_v39, 0.0  ;;  %v801_v50 = vclz %v1190_v27  ;;  %v368_v61 = vmul.f32 7.656e+10, %v367_v31 }
 0x36a   : > { %v380_v25 = vadd.f32 7.183908e-13, %v379_v60  ;;  %vm825_vm15 = vweird.f32 %v1960_v13  ;;  %vm1522_vm0 = vmmov 1   ;;  %vm359_vm6 = vcmask 0  }
 0x36b   : > { %v346_v5 = vadd.f32 %v345_v15, %v337_v26  ;;  %v1191_v38 = vadd.s32 4294967294, %v801_v50  ;;  %v369_v30 = vadd.f32 6.96e+09, %v368_v61 }
 0x36c   : > { %v854_v17 = vmul.f32 %v1930_v4, %v380_v25  ;;  %v820_v4 = vsel %vm735_vm10, %v819_v14, %v2075_v44 }
 0x36d   : > { %v349_v34 = vadd.f32 %v348_v1, %v346_v5  ;;  %vm1192_vm9 = vcmp.lt.s32.totalorder %v1191_v38, 0  ;;  %v533_v5 = vmul.f32 %v1938_v28, %v1901_v57 }
 0x36e   : > { %v804_v23 = vsel %vm1192_vm9, 0, %v1191_v38 }
 0x36f   : > { %v809_v41 = vsub.s32 4294967266, %v804_v23  ;;  %v805_v29 = vsub.s32 32, %v804_v23  ;;  %v806_v53 = vshll.u32 %v797_v2, %v804_v23 }
 0x371   : > { %v810_v18 = vadd.s32 127, %v809_v41  ;;  %v807_v54 = vshrl.u32 %v789_v36, %v805_v29 }
 0x373   : > { %v811_v48 = vshll.u32 %v810_v18, 23  ;;  %v808_v56 = vor.u32 %v807_v54, %v806_v53 }
 0x375   : > { %v812_v45 = vor.u32 4788187, %v811_v48  ;;  %v815_v12 = vcvt.s32.f32 %v808_v56  ;;  %v2125_v56 = vshrl.u32 %v361_v51, 7 }
 0x377   : > { %v813_v11 = vand.u32 2147483647, %v812_v45 }
 0x379   : > { %v816_v59 = vmul.f32 %v815_v12, %v813_v11 }
 0x37b   : > { %v817_v37 = vxor.u32 2147483648, %v816_v59 }
 0x37d   : > { %v818_v8 = vsel %vm735_vm10, %v817_v37, %v816_v59 }
 0x37e   : > { %v821_v9 = vsel %vm2086_vm11, %v1960_v13, %v818_v8  ;;  %v339_v8 = vld [vmem:[#allocation2] sm:$0x1] }
 0x37f   : > { %1319 = vcosq.f32 %v821_v9 }
 0x380   : > { %1321 = vsinq.f32 %v821_v9 }
 0x381   : > { %1323 = vrcp.f32 %v369_v30 }
 0x383   : > { %350 = vadd.xlane.f32.xlu1 %v349_v34  ;;  %v517_v21 = vpop.permute.xlu0 %516 }
 0x384   : > { %v532_v26 = vmul.f32 %v517_v21, %v1899_v6 }
 0x386   : > { %v534_v34 = vadd.f32 %v533_v5, %v532_v26 }
 0x38c   : > { %v1320_v58 = vpop.eup %1319 }
 0x38d   : > { %v1322_v47 = vpop.eup %1321  ;;  %v832_v2 = vxor.u32 2147483648, %v1320_v58 }
 0x38e   : > { %v1324_v49 = vpop.eup %1323  ;;  %v829_v15 = vxor.u32 2147483648, %v1322_v47 }
 0x38f   : > { %v730_v39 = vmul.f32 %v1324_v49, %v369_v30 }
 0x391   : > { %v731_v50 = vsub.f32 2.0, %v730_v39 }
 0x392   : > { %v929_v52 = vpop.permute.xlu0 %928  ;;  %v927_v46 = vpop.permute.xlu1 %926 }
 0x393   : > { %v930_v24 = vsel %vm513_vm1, %v927_v46, %v929_v52  ;;  %v732_v41 = vmul.f32 %v1324_v49, %v731_v50 }
 0x394   : > { %932 = vadd.xlane.f32.xlu0 %v930_v24 }
 0x395   : > { %v837_v29 = vmul.f32 %v732_v41, %v732_v41 }
 0x39f   : > { %v567_v62 = vpop.permute.xlu1 %566  ;;  %v623_v22 = vpop.permute.xlu0 %622 }
 0x3a0   : > { %v625_v28 = vsel %vm494_vm3, %v623_v22, %v2069_v35 }
 0x3a4   : > { %v703_v33 = vpop.permute.xlu1 %702  ;;  %v573_v27 = vpop.permute.xlu0 %572 }
 0x3a5   : > { %v705_v19 = vsel %vm494_vm3, %v703_v33, %v1923_v0  ;;  %v822_v0 = vsel %vm2086_vm11, 0, %v820_v4 }
 0x3a6   : > { %v826_v16 = vand.u32 3, %v822_v0 }
 0x3a8   : > { %v519_v40 = vpop.permute.xlu1 %518  ;;  %vm828_vm12 = vcmp.eq.s32.totalorder %v826_v16, 0  ;;  %vm831_vm13 = vcmp.eq.s32.totalorder %v826_v16, 2  ;;  %vm827_vm14 = vcmp.lt.s32.totalorder %v826_v16, 2  ;;  %v723_v6 = vpop.permute.xlu0 %722 }
 0x3a9   : > { %v535_v44 = vmul.f32 %v519_v40, %v1914_v3  ;;  %v830_v32 = vsel %vm828_vm12, %v1320_v58, %v829_v15  ;;  %v833_v1 = vsel %vm831_vm13, %v832_v2, %v1322_v47  ;;  %v1523_v40 = vmov 0.0   ;;  %v942_v15 = vld [vmem:[#allocation5] sm:$0x1] }
 0x3aa   : > { %v834_v23 = vsel %vm827_vm14, %v830_v32, %v833_v1 }
 0x3ab   : > { %v536_v38 = vadd.f32 %v535_v44, %v534_v34  ;;  %v835_v52 = vsel %vm825_vm15, nan, %v834_v23 }
 0x3ac   : > { %v629_v20 = vpop.permute.xlu1 %628  ;;  %v836_v36 = vmul.f32 6.6743e-11, %v835_v52 }
 0x3ad   : > { %v569_v57 = vsel %vm494_vm3, %v567_v62, %v536_v38  ;;  %v631_v13 = vsel %vm493_vm4, %v629_v20, %v625_v28  ;;  %v364_v62 = vstv %s1184_s22 }
 0x3ae   : > { %v575_v18 = vsel %vm493_vm4, %v573_v27, %v569_v57  ;;  %v838_v11 = vmul.f32 %v837_v29, %v836_v36  ;;  %v365_v33 = vadd.s32 %v364_v62, %v2125_v56 }
 0x3b0   : > { %v709_v7 = vpop.permute.xlu1 %708 }
 0x3b1   : > { %v711_v42 = vsel %vm493_vm4, %v709_v7, %v705_v19 }
 0x3b2   : > { %v855_v10 = vadd.f32 %v854_v17, %v711_v42 }
 0x3b4   : > { %v725_v21 = vpop.permute.xlu1 %724  ;;  %v856_v45 = vmul.f32 -8.947585e+16, %v855_v10 }
 0x3b5   : > { %v726_v3 = vsel %vm513_vm1, %v723_v6, %v725_v21  ;;  %vm366_vm1 = vcmp.lt.s32.totalorder %v365_v33, 12  ;;  %v866_v6 = vld [vmem:[#allocation3] sm:$0x1] }
 0x3b6   : > { %v728_v54 = vmul.f32 %v726_v3, %v575_v18  ;;  %v878_v3 = vld [vmem:[#allocation4] sm:$0x1] }
 0x3d1   : > { %v848_v46 = vpop.permute.xlu0 %847  ;;  %v850_v24 = vpop.permute.xlu1 %849 }
 0x3d2   : > { %v851_v53 = vsel %vm501_vm2, %v848_v46, %v850_v24 }
 0x3d3   : > { %v853_v48 = vsub.f32 %v631_v13, %v851_v53 }
 0x3d5   : > { %v857_v35 = vadd.f32 %v853_v48, %v728_v54 }
 0x3d7   : > { %v858_v12 = vadd.f32 %v857_v35, %v856_v45 }
 0x3d9   : > { %v859_v55 = vadd.f32 %v858_v12, %v838_v11 }
 0x3db   : > { %v860_v59 = vmul.f32 %v859_v55, %v859_v55 }
 0x3dd   : > { %vm861_vm3 = vcmp.ne.f32.partialorder %v860_v59, %v860_v59 }
 0x3de   : > { %vm862_vm5 = vmxor %vm861_vm3, %vm1522_vm0 }
 0x3df   : > { %vm865_vm2 = vmand %vm862_vm5, %vm366_vm1 }
 0x3e0   : > { %v867_v60 = vsel %vm865_vm2, %v860_v59, 0.0  ;;  %v879_v51 = vsel %vm865_vm2, 1.0, %v1523_v40 }
 0x3e1   : > { %868 = vadd.xlane.f32.xlu0 %v867_v60 }
 0x3e5   : > { %880 = vadd.xlane.f32.xlu0 %v879_v51 }
 0x40c   : > { %v351_v37 = vpop.xlane.xlu1 %350 }
 0x40d   : > { %v352_v31 = vrot.slane %v351_v37, 4 }
 0x40f   : > { %v353_v25 = vadd.f32 %v352_v31, %v351_v37 }
 0x411   : > { %v354_v20 = vrot.slane %v353_v25, 2 }
 0x413   : > { %v355_v61 = vadd.f32 %v354_v20, %v353_v25 }
 0x415   : > { %v356_v63 = vrot.slane %v355_v61, 1 }
 0x417   : > { %v357_v17 = vadd.f32 %v356_v63, %v355_v61 }
 0x419   : > { %v358_v19 = vadd.f32 %v357_v17, %v339_v8 }
 0x41b   : > { %360 = vst.msk [vmem:[#allocation2] sm:$0x1] %vm359_vm6, %v358_v19 }
 0x41d   : > { %v933_v7 = vpop.xlane.xlu0 %932 }
 0x41e   : > { %v934_v9 = vmul.f32 0.007874016, %v933_v7 }
 0x420   : > { %1325 = vrsqrt.f32 %v934_v9  ;;  %vm937_vm7 = vcmp.eq.f32.partialorder %v934_v9, inf  ;;  %v940_v10 = vand.u32 2147483648, %v934_v9  ;;  %vm939_vm8 = vcmp.eq.f32.partialorder %v934_v9, 0.0 }
 0x42d   : > { %v1326_v42 = vpop.eup %1325 }
 0x42e   : > { %v936_v30 = vmul.f32 %v1326_v42, %v934_v9 }
 0x430   : > { %v938_v14 = vsel %vm937_vm7, %v934_v9, %v936_v30 }
 0x431   : > { %v941_v4 = vsel %vm939_vm8, %v940_v10, %v938_v14 }
 0x432   : > { %v943_v0 = vsel %vm366_vm1, %v941_v4, 0.0 }
 0x433   : > { %v944_v58 = vrot.slane %v943_v0, 4 }
 0x435   : > { %v945_v47 = vadd.f32 %v944_v58, %v943_v0 }
 0x437   : > { %v946_v16 = vrot.slane %v945_v47, 2 }
 0x439   : > { %v947_v49 = vadd.f32 %v946_v16, %v945_v47 }
 0x43b   : > { %v948_v22 = vrot.slane %v947_v49, 1 }
 0x43d   : > { %v949_v2 = vadd.f32 %v948_v22, %v947_v49 }
 0x43f   : > { %v950_v26 = vadd.f32 %v949_v2, %v942_v15 }
 0x441   : > { %951 = vst.msk [vmem:[#allocation5] sm:$0x1] %vm359_vm6, %v950_v26 }
 0x46a   : > { %v869_v39 = vpop.xlane.xlu0 %868 }
 0x46b   : > { %v870_v5 = vrot.slane %v869_v39, 4 }
 0x46d   : > { %v871_v44 = vadd.f32 %v870_v5, %v869_v39 }
 0x46e   : > { %v881_v32 = vpop.xlane.xlu0 %880 }
 0x46f   : > { %v872_v1 = vrot.slane %v871_v44, 2  ;;  %v882_v34 = vrot.slane %v881_v32, 4 }
 0x471   : > { %v873_v27 = vadd.f32 %v872_v1, %v871_v44  ;;  %v883_v50 = vadd.f32 %v882_v34, %v881_v32 }
 0x473   : > { %v874_v38 = vrot.slane %v873_v27, 1  ;;  %v884_v23 = vrot.slane %v883_v50, 2 }
 0x475   : > { %v875_v21 = vadd.f32 %v874_v38, %v873_v27  ;;  %v885_v41 = vadd.f32 %v884_v23, %v883_v50 }
 0x477   : > { %v876_v52 = vadd.f32 %v875_v21, %v866_v6  ;;  %v886_v57 = vrot.slane %v885_v41, 1 }
 0x479   : > { %877 = vst.msk [vmem:[#allocation3] sm:$0x1] %vm359_vm6, %v876_v52  ;;  %v887_v28 = vadd.f32 %v886_v57, %v885_v41  ;;  %955 = sbr.rel (%p1193_p4) target bundleno = 1384 (0x568), region = 52 }
 0x47b   : > { %v888_v46 = vadd.f32 %v887_v28, %v878_v3 }
 0x47d   : > { %889 = vst.msk [vmem:[#allocation4] sm:$0x1] %vm359_vm6, %v888_v46 }
 0x47e   : > { %v1524_v36 = vmov 0   ;;  %v969_v29 = vld [vmem:[#allocation5] sm:$0x1]  ;;  %v956_v45 = vld [vmem:[#allocation2] sm:$0x1]  ;;  %v1002_v47 = vsub.s32 0, %v2125_v56 }
 0x47f   : > { %1328 = vset.pattern.permute.xlu1 %v1524_v36  ;;  %1327 = vset.pattern.permute.xlu0 %v1524_v36  ;;  %v970_v13 = vmul.f32 0.083333336, %v969_v29  ;;  %v957_v62 = vmul.f32 7.387707e-05, %v956_v45  ;;  %vm1005_vm14 = vcmp.eq.s32.totalorder %v1909_v43, 1  ;;  %vm1017_vm15 = vcmp.eq.s32.totalorder %v1909_v43, 2 }
 0x480   : > { %v958_v18 = vld [vmem:[#allocation3] sm:$0x1]  ;;  %vm1029_vm1 = vcmp.eq.s32.totalorder %v1909_v43, 3  ;;  %vm1041_vm3 = vcmp.eq.s32.totalorder %v1909_v43, 4  ;;  %vm1053_vm0 = vcmp.eq.s32.totalorder %v1909_v43, 5 }
 0x481   : > { %vm973_vm9 = vcmp.eq.f32.partialorder %v970_v13, inf  ;;  %v976_v11 = vand.u32 2147483648, %v970_v13  ;;  %vm975_vm10 = vcmp.eq.f32.partialorder %v970_v13, 0.0 }
 0x484   : > { %v959_v24 = vld [vmem:[#allocation4] sm:$0x1] }
 0x485   : > { %1329 = vrcp.f32 %v959_v24 }
 0x486   : > { %1331 = vrsqrt.f32 %v970_v13 }
 0x492   : > { %v1330_v53 = vpop.eup %1329 }
 0x493   : > { %v961_v54 = vmul.f32 %v1330_v53, %v958_v18  ;;  %v1332_v48 = vpop.eup %1331 }
 0x494   : > { %v972_v35 = vmul.f32 %v1332_v48, %v970_v13 }
 0x495   : > { %1333 = vrsqrt.f32 %v961_v54  ;;  %vm964_vm11 = vcmp.eq.f32.partialorder %v961_v54, inf  ;;  %v967_v55 = vand.u32 2147483648, %v961_v54  ;;  %vm966_vm12 = vcmp.eq.f32.partialorder %v961_v54, 0.0 }
 0x496   : > { %v974_v12 = vsel %vm973_vm9, %v970_v13, %v972_v35  ;;  %1335 = vlog2.f32 %v957_v62 }
 0x497   : > { %v977_v60 = vsel %vm975_vm10, %v976_v11, %v974_v12 }
 0x4a2   : > { %v1334_v33 = vpop.eup %1333 }
 0x4a3   : > { %v963_v59 = vmul.f32 %v1334_v33, %v961_v54  ;;  %v1336_v31 = vpop.eup %1335 }
 0x4a4   : > { %v983_v25 = vmul.f32 0.6931472, %v1336_v31 }
 0x4a5   : > { %v965_v40 = vsel %vm964_vm11, %v961_v54, %v963_v59 }
 0x4a6   : > { %v968_v51 = vsel %vm966_vm12, %v967_v55, %v965_v40  ;;  %v984_v63 = vmul.f32 0.4342945, %v983_v25 }
 0x4a7   : > { %v978_v37 = vadd.f32 %v977_v60, %v968_v51 }
 0x4a9   : > { %1020 = vperm.xlu1 %1328, %v978_v37   ;;  %1337 = vlog2.f32 %v978_v37  ;;  %vm986_vm13 = vcmp.lt.f32.partialorder %v957_v62, %v978_v37 }
 0x4ad   : > { %1032 = vperm.xlu1 %1328, %v957_v62  }
 0x4b1   : > { %1056 = vperm.xlu1 %1328, %v977_v60  }
 0x4b6   : > { %v1338_v20 = vpop.eup %1337 }
 0x4b7   : > { %v980_v61 = vmul.f32 0.6931472, %v1338_v20 }
 0x4b9   : > { %v981_v8 = vmul.f32 0.4342945, %v980_v61 }
 0x4bb   : > { %v985_v17 = vsub.f32 %v981_v8, %v984_v63 }
 0x4bd   : > { %v1209_v19 = vtrunc.f32 %v985_v17 }
 0x4bf   : > { %v1210_v7 = vcvt.f32.s32 %v1209_v19 }
 0x4c1   : > { %v988_v9 = vcvt.s32.f32 %v1210_v7 }
 0x4c3   : > { %v989_v42 = vsel %vm986_vm13, %v988_v9, 0.0 }
 0x4c4   : > { %v990_v30 = vmul.f32 2.3025851, %v989_v42 }
 0x4c6   : > { %v991_v10 = vmul.f32 1.442695, %v990_v30 }
 0x4c8   : > { %1339 = vpow2.f32 %v991_v10 }
 0x4d5   : > { %v1340_v14 = vpop.eup %1339 }
 0x4d6   : > { %v993_v4 = vmul.f32 %v1340_v14, %v957_v62 }
 0x4d8   : > { %v994_v0 = vadd.f32 %v993_v4, %v978_v37 }
 0x4da   : > { %997 = vperm.xlu0 %1327, %v994_v0  }
 0x4de   : > { %1008 = vperm.xlu0 %1327, %v993_v4  }
 0x4e2   : > { %1044 = vperm.xlu0 %1327, %v968_v51  }
 0x524   : > { %v1021_v58 = vpop.permute.xlu1 %1020 }
 0x525   : > { %v1026_v2 = vrot.slane %v1021_v58, %v1002_v47 }
 0x527   : > { %v1027_v34 = vsel %vm1017_vm15, %v1026_v2, 0.0 }
 0x528   : > { %v1033_v49 = vpop.permute.xlu1 %1032 }
 0x529   : > { %v1038_v39 = vrot.slane %v1033_v49, %v1002_v47 }
 0x52b   : > { %v1039_v38 = vsel %vm1029_vm1, %v1038_v39, 0.0 }
 0x52c   : > { %v1057_v32 = vpop.permute.xlu1 %1056 }
 0x52d   : > { %v1062_v23 = vrot.slane %v1057_v32, %v1002_v47 }
 0x52f   : > { %v1063_v52 = vsel %vm1053_vm0, %v1062_v23, 0.0 }
 0x555   : > { %v998_v16 = vpop.permute.xlu0 %997 }
 0x556   : > { %v1003_v22 = vrot.slane %v998_v16, %v1002_v47 }
 0x558   : > { %v1004_v5 = vsel %vm493_vm4, %v1003_v22, 0.0  ;;  %vm1065_vm4 = vcmask 57344  }
 0x559   : > { %v1009_v15 = vpop.permute.xlu0 %1008 }
 0x55a   : > { %v1014_v26 = vrot.slane %v1009_v15, %v1002_v47 }
 0x55c   : > { %v1015_v44 = vsel %vm1005_vm14, %v1014_v26, 0.0 }
 0x55d   : > { %v1016_v1 = vadd.f32 %v1015_v44, %v1004_v5  ;;  %v1045_v56 = vpop.permute.xlu0 %1044 }
 0x55e   : > { %v1050_v27 = vrot.slane %v1045_v56, %v1002_v47 }
 0x55f   : > { %v1028_v50 = vadd.f32 %v1027_v34, %v1016_v1 }
 0x560   : > { %v1051_v21 = vsel %vm1041_vm3, %v1050_v27, 0.0 }
 0x561   : > { %v1040_v6 = vadd.f32 %v1039_v38, %v1028_v50 }
 0x563   : > { %v1052_v41 = vadd.f32 %v1051_v21, %v1040_v6 }
 0x565   : > { %v1064_v57 = vadd.f32 %v1063_v52, %v1052_v41 }
 0x567   : > { %1066 = vst.msk [vmem:[#allocation12] sm:$0x1] %vm1065_vm4, %v1064_v57 }
 0x568 PF: > { %p1232_p5 = scmp.eq.s32.totalorder %s1565_s16, 1  ;;  %s1525_s28 = smov [#allocation12]  }
 0x569   : > { %s1074_s29 = sshll.u32 %s1525_s28, 4  ;;  %s1075_s29 = int_to_ptr.vmem [resolvable:$true] %s1074_s29 }
 0x56a   : > { %s1425_s0 = scalar_lea.vmem %s1075_s29, 16  ;;  %s1431_s1 = scalar_lea.vmem %s1075_s29, 32 }
 0x56b   : > { %p1426_p6 = scmp.ne.s32.totalorder %s1075_s29, %s1425_s0  ;;  %p1432_p12 = scmp.lt.s32.totalorder %s1075_s29, %s1075_s29 }
 0x56c   : > { %p1433_p0 = scmp.lt.s32.totalorder %s1431_s1, %s1425_s0 }
 0x56d   : > { %p1427_p9 = pnand %p1426_p6, %p1232_p5 }
 0x56e   : > { %p1434_p7 = por %p1433_p0, %p1432_p12 }
 0x56f   : > { %p1428_p10 = pneg %p1427_p9 }
 0x571   : > { %p1435_p11 = pnand %p1434_p7, %p1428_p10 }
 0x573   : > { %1438 = shalt.err (!%p1435_p11)
}
 0x574   : > { %1218 = dma.vmem_to_hbm [thread:$0]  (%p1232_p5), %s1075_s29, 16, %s2171_s3, [#allocation8]  }
 0x575   : > { %1474 = dma.done.wait (%p1232_p5), [#allocation8], 16  }
 0x576   : > { %1476 = vsyncadd (%p1232_p5), [#allocation8], 4294967280 }
 0x577 PF: > { %s2192_s24 = sld [smem:[#allocation16_spill]]  ;;  %p17_p1 = scmp.ge.s32.totalorder %s1568_s17, 4  }
 0x578   : > { %s2193_s12 = smov %s1483_s13  ;;  %s2194_s13 = smov %s1487_s14 }
 0x579   : > { %s2196_s15 = smov %s1568_s17  ;;  %19 = sbr.rel (!%p17_p1) target bundleno = 9 (0x9), region = 105 }
 0x57d   : > { %s2195_s14 = smov %s2192_s24 }
 0x57e   :  { %1087 = vsyncpa [#allocation7], 1 }
 0x57f   :  { %1089 = vsyncpa [#allocation7 + $0x1], 1 }
 0x580   :  { %1090 = vsyncpa [#allocation10], 1 }
 0x581   :  { %1092 = vsyncpa [#allocation10 + $0x1], 1 }
 0x582   :  { %1093 = vsyncpa [#allocation8], 1 }
 0x583   :  { %1095 = vsyncpa [#allocation8 + $0x1], 1 }

</bundles_post_ra>
